<compile_context>
chip_gen: v7x
topology: tpu7x:2x2x1
jax: 0.10.0
libtpu: 0.0.40
codegen_flags: <defaults>
</compile_context>

<pallas_src>
import functools

import jax
import jax.numpy as jnp
from jax import lax
from jax.experimental import pallas as pl
from jax.experimental.pallas import tpu as pltpu

EMBEDDING_DIM = 50
HIDDEN_DIM = 100
WINDOW = 3            # 3-word window per example
LANE = 128
SUBLANE = 8
TILE_B_MAX = 1024     # batch rows per grid step (few MiB of VMEM per step)
USE_BF16_MXU = True   # bf16 MXU operands + f32 accumulation (2-4x MXU throughput)


def _round_up(x, m):
    return ((x + m - 1) // m) * m


def _nernn_kernel(n_out, vocab, words_ref, tbl_ref, b1_ref, w2_ref, b2_ref, out_ref):
    """One batch tile: one-hot @ folded(emb@fc1) -> +b1 -> ReLU -> fc2 -> log_softmax."""
    tile_b = words_ref.shape[0]
    k_fold = tbl_ref.shape[0]            # round_up(3 * vocab, 128)
    mxu_dtype = tbl_ref.dtype            # bf16 or f32

    # Single combined one-hot over the folded (3V) axis.  One iota slab (hoisted,
    # reused for all three window positions); window p's ids are offset by p*vocab.
    # The three hit ranges are disjoint (ids < vocab), so logical_or == sum.
    iota = lax.broadcasted_iota(jnp.int32, (tile_b, k_fold), 1)
    hit = jnp.zeros((tile_b, k_fold), jnp.bool_)
    for p in range(WINDOW):
        ids = words_ref[:, p:p + 1] + p * vocab                 # (tile_b, 1) int32
        hit = jnp.logical_or(hit, iota == ids)
    onehot = hit.astype(mxu_dtype)                              # exact in bf16 (0/1)

    # Fused gather + fc1: one MXU matmul against the folded table, f32 accumulation.
    h_pre = jnp.dot(onehot, tbl_ref[...],
                    preferred_element_type=jnp.float32)         # (tile_b, H_pad) f32
    h = jnp.maximum(h_pre + b1_ref[...], 0.0)                   # ReLU, f32

    logits = jnp.dot(h.astype(mxu_dtype), w2_ref[...],
                     preferred_element_type=jnp.float32) + b2_ref[...]  # (tile_b, O_pad)

    # Mask padded output lanes with -inf so the log_softmax reductions ignore them.
    # (The stored slab keeps -inf in padded lanes; the wrapper slices [:, :n_out].)
    lane_idx = lax.broadcasted_iota(jnp.int32, logits.shape, 1)
    logits = jnp.where(lane_idx < n_out, logits, -jnp.inf)

    # Numerically stable log_softmax along dim=1; lane-dense (tile_b, 128) f32 store.
    m = jnp.max(logits, axis=1, keepdims=True)
    shifted = logits - m
    lse = jnp.log(jnp.sum(jnp.exp(shifted), axis=1, keepdims=True))
    out_ref[...] = (shifted - lse).astype(out_ref.dtype)


def prepare_params(params, use_bf16=USE_BF16_MXU):
    """One-time fold/pad of the PyTorch-layout params into lane-aligned kernel layout."""
    emb = params["embeddings"].astype(jnp.float32)      # (V, E)
    w1 = params["w1"].astype(jnp.float32)               # (3E, H)  (pre-transposed Linear)
    b1 = params["b1"].astype(jnp.float32).reshape(-1)   # (H,)
    w2 = params["w2"].astype(jnp.float32)               # (H, O)
    b2 = params["b2"].astype(jnp.float32).reshape(-1)   # (O,)

    V, E = emb.shape
    H = w1.shape[1]
    O = w2.shape[1]
    assert w1.shape[0] == WINDOW * E

    h_pad = _round_up(H, LANE)
    o_pad = _round_up(O, LANE)
    k_fold = _round_up(WINDOW * V, LANE)

    # Fold the embedding table into fc1:  table[p*V + v, :] = emb[v] @ w1[p]
    # (computed once, in f32 at HIGHEST precision; padded rows/cols are zero).
    w1_r = w1.reshape(WINDOW, E, H)
    tbl = jnp.einsum("ve,peh->pvh", emb, w1_r,
                     precision=lax.Precision.HIGHEST).reshape(WINDOW * V, H)
    tbl_p = jnp.zeros((k_fold, h_pad), jnp.float32).at[:WINDOW * V, :H].set(tbl)
    b1_p = jnp.zeros((1, h_pad), jnp.float32).at[0, :H].set(b1)
    w2_p = jnp.zeros((h_pad, o_pad), jnp.float32).at[:H, :O].set(w2)
    b2_p = jnp.zeros((1, o_pad), jnp.float32).at[0, :O].set(b2)

    mxu_dtype = jnp.bfloat16 if use_bf16 else jnp.float32
    return {"table": tbl_p.astype(mxu_dtype), "b1": b1_p,
            "w2": w2_p.astype(mxu_dtype), "b2": b2_p,
            "n_out": O, "vocab_size": V}


def nernn_forward(words, features, prepped):
    """words: (B, 3) int32 token ids.  `features` is unused by the reference forward."""
    del features  # the PyTorch forward ignores `features`
    tbl, b1, w2, b2 = prepped["table"], prepped["b1"], prepped["w2"], prepped["b2"]
    n_out = prepped["n_out"]
    vocab = prepped["vocab_size"]
    o_pad = w2.shape[1]

    B = words.shape[0]
    b_aligned = _round_up(max(B, 1), SUBLANE)
    # >= 2 grid steps when possible (keeps both v7x TensorCores busy under the
    # "parallel" batch axis), capped at TILE_B_MAX to bound per-step VMEM.
    tile_b = max(SUBLANE, min(TILE_B_MAX, _round_up(pl.cdiv(b_aligned, 2), SUBLANE)))
    b_pad = _round_up(B, tile_b)
    # Padded batch rows use token id 0 (finite contribution; sliced off below).
    words_p = jnp.zeros((b_pad, WINDOW), jnp.int32).at[:B].set(words.astype(jnp.int32))

    kernel = functools.partial(_nernn_kernel, n_out, vocab)

    out = pl.pallas_call(
        kernel,
        out_shape=jax.ShapeDtypeStruct((b_pad, o_pad), jnp.float32),
        grid=(b_pad // tile_b,),
        in_specs=[
            pl.BlockSpec((tile_b, WINDOW), lambda i: (i, 0)),   # words: streamed per tile
            pl.BlockSpec(tbl.shape, lambda i: (0, 0)),          # VMEM-resident folded table
            pl.BlockSpec(b1.shape, lambda i: (0, 0)),
            pl.BlockSpec(w2.shape, lambda i: (0, 0)),
            pl.BlockSpec(b2.shape, lambda i: (0, 0)),
        ],
        out_specs=pl.BlockSpec((tile_b, o_pad), lambda i: (i, 0)),
        compiler_params=pltpu.CompilerParams(
            dimension_semantics=("parallel",),                  # shard grid across TCs (v7x)
            vmem_limit_bytes=32 * 1024 * 1024),                 # headroom above v5e default
    )(words_p, tbl, b1, w2, b2)

    return out[:B, :n_out]


def init_params(key, vocab_size, embedding_dim, hidden_dim, output_size):
    k_emb, k_w1, k_b1, k_w2, k_b2 = jax.random.split(key, 5)
    emb = jax.random.normal(k_emb, (vocab_size, embedding_dim), jnp.float32)
    emb = emb.at[0].set(0.0)  # padding_idx=0
    in1 = embedding_dim * WINDOW
    lim1 = 1.0 / (in1 ** 0.5)
    lim2 = 1.0 / (hidden_dim ** 0.5)
    # Linear weights stored pre-transposed: (in, out)
    w1 = jax.random.uniform(k_w1, (in1, hidden_dim), jnp.float32, -lim1, lim1)
    b1 = jax.random.uniform(k_b1, (hidden_dim,), jnp.float32, -lim1, lim1)
    w2 = jax.random.uniform(k_w2, (hidden_dim, output_size), jnp.float32, -lim2, lim2)
    b2 = jax.random.uniform(k_b2, (output_size,), jnp.float32, -lim2, lim2)
    return {"embeddings": emb, "w1": w1, "b1": b1, "w2": w2, "b2": b2}


def nernn_reference(words, params):
    emb = params["embeddings"]
    x = jnp.take(emb, words, axis=0).reshape(words.shape[0], -1)
    h = jnp.maximum(
        jnp.dot(x, params["w1"], precision=lax.Precision.HIGHEST) + params["b1"][None, :],
        0.0)
    logits = (jnp.dot(h, params["w2"], precision=lax.Precision.HIGHEST)
              + params["b2"][None, :])
    return jax.nn.log_softmax(logits, axis=1)


if __name__ == "__main__":
    key = jax.random.PRNGKey(0)
    k_params, k_words, k_feat = jax.random.split(key, 3)

    vocab_size = 64
    output_size = 8
    batch = 300  # not a tile multiple -> exercises batch padding and a 2-step grid

    params = init_params(k_params, vocab_size, EMBEDDING_DIM, HIDDEN_DIM, output_size)
    prepped = prepare_params(params)

    words = jax.random.randint(k_words, (batch, WINDOW), 0, vocab_size, dtype=jnp.int32)
    features = jax.random.normal(k_feat, (batch, 4), jnp.float32)  # unused by forward

    out = jax.block_until_ready(nernn_forward(words, features, prepped))
    ref = nernn_reference(words, params)

    assert out.shape == (batch, output_size)
    assert bool(jnp.all(jnp.isfinite(out)))
    atol = 5e-2 if USE_BF16_MXU else 2e-4   # bf16 MXU operands vs. f32 HIGHEST reference
    assert jnp.allclose(out, ref, atol=atol, rtol=0.0), float(jnp.max(jnp.abs(out - ref)))

    print("KERNEL_OK")
</pallas_src>

<mosaic_0001>
module attributes {stable_mosaic.version = 11 : i64} {
  func.func @_nernn_kernel(%arg0: i32, %arg1: memref<152x3xi32, #tpu.memory_space<vmem>>, %arg2: memref<256x128xbf16, #tpu.memory_space<vmem>>, %arg3: memref<1x128xf32, #tpu.memory_space<vmem>>, %arg4: memref<128x128xbf16, #tpu.memory_space<vmem>>, %arg5: memref<1x128xf32, #tpu.memory_space<vmem>>, %arg6: memref<152x128xf32, #tpu.memory_space<vmem>>) attributes {dimension_semantics = [#tpu.dimension_semantics<parallel>], iteration_bounds = array<i64: 2>, scalar_prefetch = 0 : i64, scratch_operands = 0 : i64, tpu.core_type = #tpu.core_type<tc>, window_params = [{transform_indices = @transform_0, window_bounds = array<i64: 152, 3>}, {pipeline_mode = #tpu.pipeline_mode<synchronous>, transform_indices = @transform_1, window_bounds = array<i64: 256, 128>}, {pipeline_mode = #tpu.pipeline_mode<synchronous>, transform_indices = @transform_2, window_bounds = array<i64: 1, 128>}, {pipeline_mode = #tpu.pipeline_mode<synchronous>, transform_indices = @transform_3, window_bounds = array<i64: 128, 128>}, {pipeline_mode = #tpu.pipeline_mode<synchronous>, transform_indices = @transform_4, window_bounds = array<i64: 1, 128>}, {transform_indices = @transform_5, window_bounds = array<i64: 152, 128>}]} {
    %0 = tpu.iota {dimensions = array<i32: 1>} : vector<152x256xi32>
    %false = arith.constant false
    %1 = vector.broadcast %false : i1 to vector<152x256xi1>
    %c0 = arith.constant 0 : index
    %c0_0 = arith.constant 0 : index
    %2 = vector.load %arg1[%c0, %c0_0] : memref<152x3xi32, #tpu.memory_space<vmem>>, vector<152x1xi32>
    %c0_i32 = arith.constant 0 : i32
    %3 = vector.broadcast %c0_i32 : i32 to vector<152x1xi32>
    %4 = arith.addi %2, %3 : vector<152x1xi32>
    %5 = vector.broadcast %4 : vector<152x1xi32> to vector<152x256xi32>
    %6 = arith.cmpi eq, %0, %5 : vector<152x256xi32>
    %7 = arith.ori %1, %6 : vector<152x256xi1>
    %c0_1 = arith.constant 0 : index
    %c1 = arith.constant 1 : index
    %8 = vector.load %arg1[%c0_1, %c1] : memref<152x3xi32, #tpu.memory_space<vmem>>, vector<152x1xi32>
    %c64_i32 = arith.constant 64 : i32
    %9 = vector.broadcast %c64_i32 : i32 to vector<152x1xi32>
    %10 = arith.addi %8, %9 : vector<152x1xi32>
    %11 = vector.broadcast %10 : vector<152x1xi32> to vector<152x256xi32>
    %12 = arith.cmpi eq, %0, %11 : vector<152x256xi32>
    %13 = arith.ori %7, %12 : vector<152x256xi1>
    %c0_2 = arith.constant 0 : index
    %c2 = arith.constant 2 : index
    %14 = vector.load %arg1[%c0_2, %c2] : memref<152x3xi32, #tpu.memory_space<vmem>>, vector<152x1xi32>
    %c128_i32 = arith.constant 128 : i32
    %15 = vector.broadcast %c128_i32 : i32 to vector<152x1xi32>
    %16 = arith.addi %14, %15 : vector<152x1xi32>
    %17 = vector.broadcast %16 : vector<152x1xi32> to vector<152x256xi32>
    %18 = arith.cmpi eq, %0, %17 : vector<152x256xi32>
    %19 = arith.ori %13, %18 : vector<152x256xi1>
    %20 = arith.extui %19 : vector<152x256xi1> to vector<152x256xi32>
    %21 = arith.sitofp %20 : vector<152x256xi32> to vector<152x256xf32>
    %22 = arith.truncf %21 : vector<152x256xf32> to vector<152x256xbf16>
    %c0_3 = arith.constant 0 : index
    %c0_4 = arith.constant 0 : index
    %23 = vector.load %arg2[%c0_3, %c0_4] : memref<256x128xbf16, #tpu.memory_space<vmem>>, vector<256x128xbf16>
    %cst = arith.constant dense<0.000000e+00> : vector<152x128xf32>
    %24 = tpu.matmul %22, %23, %cst {dimension_numbers = #tpu.dot_dimension_numbers<[1], [0], [0], [1], [0, 0, 1, 1], [], []>} : vector<152x256xbf16>, vector<256x128xbf16>, vector<152x128xf32> -> vector<152x128xf32>
    %c0_5 = arith.constant 0 : index
    %c0_6 = arith.constant 0 : index
    %25 = vector.load %arg3[%c0_5, %c0_6] : memref<1x128xf32, #tpu.memory_space<vmem>>, vector<1x128xf32>
    %26 = vector.broadcast %25 : vector<1x128xf32> to vector<152x128xf32>
    %27 = arith.addf %24, %26 : vector<152x128xf32>
    %cst_7 = arith.constant 0.000000e+00 : f32
    %28 = vector.broadcast %cst_7 : f32 to vector<152x128xf32>
    %29 = arith.maximumf %27, %28 : vector<152x128xf32>
    %30 = arith.truncf %29 : vector<152x128xf32> to vector<152x128xbf16>
    %c0_8 = arith.constant 0 : index
    %c0_9 = arith.constant 0 : index
    %31 = vector.load %arg4[%c0_8, %c0_9] : memref<128x128xbf16, #tpu.memory_space<vmem>>, vector<128x128xbf16>
    %cst_10 = arith.constant dense<0.000000e+00> : vector<152x128xf32>
    %32 = tpu.matmul %30, %31, %cst_10 {dimension_numbers = #tpu.dot_dimension_numbers<[1], [0], [0], [1], [0, 0, 1, 1], [], []>} : vector<152x128xbf16>, vector<128x128xbf16>, vector<152x128xf32> -> vector<152x128xf32>
    %c0_11 = arith.constant 0 : index
    %c0_12 = arith.constant 0 : index
    %33 = vector.load %arg5[%c0_11, %c0_12] : memref<1x128xf32, #tpu.memory_space<vmem>>, vector<1x128xf32>
    %34 = vector.broadcast %33 : vector<1x128xf32> to vector<152x128xf32>
    %35 = arith.addf %32, %34 : vector<152x128xf32>
    %36 = tpu.iota {dimensions = array<i32: 1>} : vector<152x128xi32>
    %c8_i32 = arith.constant 8 : i32
    %37 = vector.broadcast %c8_i32 : i32 to vector<152x128xi32>
    %38 = arith.cmpi slt, %36, %37 : vector<152x128xi32>
    %cst_13 = arith.constant 0xFF800000 : f32
    %39 = vector.broadcast %cst_13 : f32 to vector<152x128xf32>
    %40 = arith.select %38, %35, %39 : vector<152x128xi1>, vector<152x128xf32>
    %cst_14 = arith.constant dense<0xFF800000> : vector<152xf32>
    %41 = vector.multi_reduction <maximumf>, %40, %cst_14 [1] : vector<152x128xf32> to vector<152xf32>
    %42 = vector.shape_cast %41 : vector<152xf32> to vector<152x1xf32>
    %43 = vector.broadcast %42 : vector<152x1xf32> to vector<152x128xf32>
    %44 = arith.subf %40, %43 : vector<152x128xf32>
    %45 = math.exp %44 : vector<152x128xf32>
    %cst_15 = arith.constant dense<0.000000e+00> : vector<152xf32>
    %46 = vector.multi_reduction <add>, %45, %cst_15 [1] : vector<152x128xf32> to vector<152xf32>
    %47 = vector.shape_cast %46 : vector<152xf32> to vector<152x1xf32>
    %48 = math.log %47 : vector<152x1xf32>
    %49 = vector.broadcast %48 : vector<152x1xf32> to vector<152x128xf32>
    %50 = arith.subf %44, %49 : vector<152x128xf32>
    %c0_16 = arith.constant 0 : index
    %c0_17 = arith.constant 0 : index
    %51 = vector.load %arg6[%c0_16, %c0_17] : memref<152x128xf32, #tpu.memory_space<vmem>>, vector<152x128xf32>
    tpu.vector_store %arg6[%c0_16, %c0_17], %50 {strides = array<i32>} : memref<152x128xf32, #tpu.memory_space<vmem>>, vector<152x128xf32>,
    return
  }
  func.func @transform_0(%arg0: i32) -> (i32, i32) {
    %c0_i32 = arith.constant 0 : i32
    %c0_i32_0 = arith.constant 0 : i32
    return %arg0, %c0_i32 : i32, i32
  }
  func.func @transform_1(%arg0: i32) -> (i32, i32) {
    %c0_i32 = arith.constant 0 : i32
    %c0_i32_0 = arith.constant 0 : i32
    %c0_i32_1 = arith.constant 0 : i32
    return %c0_i32, %c0_i32_0 : i32, i32
  }
  func.func @transform_2(%arg0: i32) -> (i32, i32) {
    %c0_i32 = arith.constant 0 : i32
    %c0_i32_0 = arith.constant 0 : i32
    %c0_i32_1 = arith.constant 0 : i32
    return %c0_i32, %c0_i32_0 : i32, i32
  }
  func.func @transform_3(%arg0: i32) -> (i32, i32) {
    %c0_i32 = arith.constant 0 : i32
    %c0_i32_0 = arith.constant 0 : i32
    %c0_i32_1 = arith.constant 0 : i32
    return %c0_i32, %c0_i32_0 : i32, i32
  }
  func.func @transform_4(%arg0: i32) -> (i32, i32) {
    %c0_i32 = arith.constant 0 : i32
    %c0_i32_0 = arith.constant 0 : i32
    %c0_i32_1 = arith.constant 0 : i32
    return %c0_i32, %c0_i32_0 : i32, i32
  }
  func.func @transform_5(%arg0: i32) -> (i32, i32) {
    %c0_i32 = arith.constant 0 : i32
    %c0_i32_0 = arith.constant 0 : i32
    return %arg0, %c0_i32 : i32, i32
  }
}

</mosaic_0001>

<bundles_post_ra>
// kernel: tpu_custom_call.1
= control target key start
LH: loop header
LB: loop body
LE: loop exit
PB: predicated region body
PF: predicated region fallthrough
CT: control target
= control target key end

     0   :  { %10 = vsyncpa [#allocation3], 0  ;;  %s2763_s0 = inlined_call_operand.vmem [shape: s32[304,3], index: 0, kind: input, shape index: {}]   ;;  %s2764_s1 = inlined_call_operand.vmem [shape: bf16[256,128], index: 1, kind: input, shape index: {}]   ;;  %s2765_s2 = inlined_call_operand.vmem [shape: f32[1,128], index: 2, kind: input, shape index: {}]   ;;  %s2766_s3 = inlined_call_operand.vmem [shape: bf16[128,128], index: 3, kind: input, shape index: {}]   ;;  %s2767_s4 = inlined_call_operand.vmem [shape: f32[1,128], index: 4, kind: input, shape index: {}]   ;;  %s2768_s5 = inlined_call_operand.hbm [shape: f32[304,128], index: 5, kind: output, shape index: {}]  }
   0x1   :  { %12 = vsyncpa [#allocation3 + $0x1], 0  ;;  %s2033_s18 = smov 0   ;;  %s2035_s19 = smov 0  }
   0x2   :  { %s2037_s20 = smov 0   ;;  %s2039_s21 = smov 0  }
   0x3 LB: > { %s2054_s22 = sadd.s32 4294967295, %s1994_s21   ;;  %s1508_s23 = sadd.s32 4294967294, %s1994_s21   ;;  %s1994_s21 = sphi %s2039_s21, %s2795_s21   ;;  %s1990_s20 = sphi %s2037_s20, %s2794_s20   ;;  %s1986_s19 = sphi %s2035_s19, %s2793_s19   ;;  %s1982_s18 = sphi %s2033_s18, %s2792_s18  }
   0x4   : > { %s2058_s24 = sadd.s32 1, %s1994_s21   ;;  %s135_s25 = sadd.s32 1, %s1990_s20 }
   0x5   : > { %s132_s26 = ssub.s32 %s1994_s21, %s2058_s24  ;;  %p145_p0 = scmp.ne.s32.totalorder %s1990_s20, %s1986_s19 }
   0x6   : > { %p133_p1 = scmp.eq.s32.totalorder %s132_s26, 0  ;;  %p146_p2 = scmp.eq.s32.totalorder %s2054_s22, 1 }
   0x7   : > { %p151_p3 = scmp.ne.s32.totalorder %s1986_s19, %s1982_s18  ;;  %p152_p4 = scmp.eq.s32.totalorder %s1508_s23, 1 }
   0x8   : > { %s2069_s27 = scalar_select %p133_p1, %s1990_s20, %s135_s25  }
   0x9   : > { %p2071_p5 = por %p146_p2, %p145_p0  ;;  %p2075_p6 = por %p152_p4, %p151_p3 }
   0xa   : > { %p1511_p7 = scmp.ge.s32.totalorder %s1994_s21, 1  ;;  %p191_p8 = scmp.lt.s32.totalorder %s1994_s21, 3 }
   0xc   : > { %p192_p9 = pnand %p1511_p7, %p191_p8 }
   0xd   : > { %s219_s30 = smul.u32 (!%p192_p9), 19, %s2054_s22  ;;  %v1996_v0 = vmov (!%p192_p9), 2   ;;  %v1997_v1 = vmov (!%p192_p9), 1   ;;  %v1832_v2 = vld [vmem:[%s2764_s1 + $0x40] sm:$0xff] (!%p192_p9)   ;;  %v1834_v4 = vld [vmem:[%s2764_s1 + $0x48] sm:$0xff] (!%p192_p9)   ;;  %v1836_v6 = vld [vmem:[%s2764_s1 + $0x50] sm:$0xff] (!%p192_p9)  }
   0xe   : > { %195 = sbr.rel (%p192_p9) target bundleno = 1101 (0x44d), region = 40  ;;  %1798 = vset.pattern.permute.xlu0 (!%p192_p9), %v1996_v0  ;;  %1797 = vset.pattern.permute.xlu1 (!%p192_p9), %v1997_v1  ;;  %v1833_v3 = vld [vmem:[%s2764_s1] sm:$0xff] (!%p192_p9)   ;;  %v1835_v5 = vld [vmem:[%s2764_s1 + $0x8] sm:$0xff] (!%p192_p9)   ;;  %v1837_v7 = vld [vmem:[%s2764_s1 + $0x10] sm:$0xff] (!%p192_p9)   ;;  %v1998_v24 = vmov (!%p192_p9), 0   ;;  %s2000_s8 = smov (!%p192_p9), [#allocation2]  }
   0xf   : > { %p220_p10 = scmp.lt.s32.totalorder (!%p192_p9), %s219_s30, 37  ;;  %1621 = vmatprep.subr.bf16.mxu0 (!%p192_p9), %v1832_v2  ;;  %v1838_v17 = vld [vmem:[%s2764_s1 + $0x58] sm:$0xff] (!%p192_p9)   ;;  %v1840_v20 = vld [vmem:[%s2764_s1 + $0x60] sm:$0xff] (!%p192_p9)   ;;  %v1842_v22 = vld [vmem:[%s2764_s1 + $0x68] sm:$0xff] (!%p192_p9)   ;;  %s1620_s17 = smul.u32 (!%p192_p9), 2432, %s2054_s22 }
  0x10   : > { %1622 = vmatpush3.bf16.msra.mxu0 (!%p192_p9), %v1833_v3  ;;  %v1839_v18 = vld [vmem:[%s2764_s1 + $0x18] sm:$0xff] (!%p192_p9)   ;;  %v1841_v21 = vld [vmem:[%s2764_s1 + $0x20] sm:$0xff] (!%p192_p9)   ;;  %v1843_v23 = vld [vmem:[%s2764_s1 + $0x28] sm:$0xff] (!%p192_p9)   ;;  %s1936_s9 = sshll.u32 (!%p192_p9), %s2000_s8, 4  ;;  %s1937_s9 = int_to_ptr.vmem [resolvable:$false] %s1936_s9 }
  0x11   : > { %1623 = vmatprep.subr.bf16.mxu0 (!%p192_p9), %v1834_v4  ;;  %v1844_v25 = vld [vmem:[%s2764_s1 + $0x70] sm:$0xff] (!%p192_p9)   ;;  %v1846_v29 = vld [vmem:[%s2764_s1 + $0x78] sm:$0xff] (!%p192_p9)   ;;  %s1938_s10 = scalar_lea.vmem (!%p192_p9), %s1937_s9, 4864 }
  0x12   : > { %v1845_v27 = vld [vmem:[%s2764_s1 + $0x30] sm:$0xff] (!%p192_p9)   ;;  %v1847_v31 = vld [vmem:[%s2764_s1 + $0x38] sm:$0xff] (!%p192_p9)  }
  0x14   : > { %1624 = vmatpush3.bf16.msra.mxu0 (!%p192_p9), %v1835_v5 }
  0x15   : > { %s2797_s30 = smov (!%p220_p10, %s219_s30), 37  ;;  %1625 = vmatprep.subr.bf16.mxu0 %v1836_v6 }
  0x16   : > { %s1512_s14 = sshll.u32 %s2797_s30, 3  ;;  %s2717_s30 = scalar_lea.hbm %s2768_s5, %s1620_s17 }
  0x17   : > { %s2102_s25 = scalar_lea.vmem %s2763_s0, %s1512_s14  ;;  %s216_s14 = sand.u32 1, %s1986_s19  }
  0x18   : > { %v230_v8 = vld [vmem:[%s2102_s25] sm:$0xff]  ;;  %v232_v9 = vld [vmem:[%s2102_s25 + $0x10] sm:$0xff]  ;;  %v231_v10 = vld [vmem:[%s2102_s25 + $0x8] sm:$0xff]  ;;  %1626 = vmatpush3.bf16.msra.mxu0 %v1837_v7  ;;  %s1751_s15 = smul.u32 152, %s216_s14  ;;  %s2722_s22 = scalar_lea.sflag [#allocation3], %s216_s14 }
  0x19   : > { %v496_v11 = vadd.s32 128, %v230_v8  ;;  %v344_v12 = vadd.s32 64, %v230_v8  ;;  %v498_v13 = vadd.s32 128, %v232_v9  ;;  %v345_v14 = vadd.s32 64, %v231_v10  ;;  %v234_v15 = vld [vmem:[%s2102_s25 + $0x20] sm:$0xff]  ;;  %1627 = vmatprep.subr.bf16.mxu0 %v1838_v17  ;;  %v233_v28 = vld [vmem:[%s2102_s25 + $0x18] sm:$0xff] }
  0x1a   : > { %v500_v16 = vadd.s32 128, %v234_v15  ;;  %v497_v19 = vadd.s32 128, %v231_v10  ;;  %v346_v26 = vadd.s32 64, %v232_v9  ;;  %v347_v30 = vadd.s32 64, %v233_v28  ;;  %v235_v32 = vld [vmem:[%s2102_s25 + $0x28] sm:$0xff]  ;;  %v237_v34 = vld [vmem:[%s2102_s25 + $0x38] sm:$0xff] }
  0x1b   : > { %516 = vperm.xlu0 %1798, %v496_v11   ;;  %364 = vperm.xlu1 %1797, %v344_v12   ;;  %v499_v33 = vadd.s32 128, %v233_v28  ;;  %v239_v35 = vld [vmem:[%s2102_s25 + $0x48] sm:$0xff]  ;;  %v348_v36 = vadd.s32 64, %v234_v15  ;;  %v2152_v37 = vld [vmem:[%s2102_s25 + $0x58] sm:$0xff]  ;;  %v236_v38 = vld [vmem:[%s2102_s25 + $0x30] sm:$0xff]  ;;  %v349_v39 = vadd.s32 64, %v235_v32 }
  0x1c   : > { %1628 = vmatpush3.bf16.msra.mxu0 %v1839_v18  ;;  %v502_v40 = vadd.s32 128, %v236_v38  ;;  %v238_v41 = vld [vmem:[%s2102_s25 + $0x40] sm:$0xff]  ;;  %v501_v43 = vadd.s32 128, %v235_v32  ;;  %v240_v44 = vld [vmem:[%s2102_s25 + $0x50] sm:$0xff]  ;;  %v350_v49 = vadd.s32 64, %v236_v38  ;;  %v351_v51 = vadd.s32 64, %v237_v34 }
  0x1d   : > { %1629 = vmatprep.subr.bf16.mxu0 %v1840_v20  ;;  %v504_v42 = vadd.s32 128, %v238_v41  ;;  %v506_v45 = vadd.s32 128, %v240_v44  ;;  %v242_v46 = vld [vmem:[%s2102_s25 + $0x60] sm:$0xff]  ;;  %v244_v48 = vld [vmem:[%s2102_s25 + $0x70] sm:$0xff]  ;;  %v503_v52 = vadd.s32 128, %v237_v34  ;;  %v243_v53 = vld [vmem:[%s2102_s25 + $0x68] sm:$0xff] }
  0x1e   : > { %v508_v47 = vadd.s32 128, %v242_v46  ;;  %v510_v50 = vadd.s32 128, %v244_v48  ;;  %v245_v54 = vld [vmem:[%s2102_s25 + $0x78] sm:$0xff]  ;;  %v2170_v55 = vld [vmem:[%s2102_s25 + $0x88] sm:$0xff]  ;;  %v2175_v56 = vld [vmem:[%s2102_s25 + $0x80] sm:$0xff]  ;;  %v352_v57 = vadd.s32 64, %v238_v41 }
  0x1f   : > { %522 = vperm.xlu0 %1798, %v498_v13   ;;  %367 = vperm.xlu1 %1797, %v345_v14   ;;  %v512_v58 = vadd.s32 128, %v2175_v56  ;;  %v2179_v59 = vld [vmem:[%s2102_s25 + $0x90] sm:$0xff]  ;;  %v353_v60 = vadd.s32 64, %v239_v35  ;;  %v505_v62 = vadd.s32 128, %v239_v35  ;;  %v354_v63 = vadd.s32 64, %v240_v44  ;;  %s2672_s16 = scalar_lea.vmem [#allocation2], %s1751_s15 }
  0x20   : > { %1630 = vmatpush3.bf16.msra.mxu0 %v1841_v21  ;;  %v362_v61 = vadd.s32 64, %v2179_v59  ;;  %v355_v2 = vadd.s32 64, %v2152_v37  ;;  %v507_v3 = vadd.s32 128, %v2152_v37  ;;  %v356_v4 = vadd.s32 64, %v242_v46  ;;  %s1446_s23 = sshll.u32 %s2672_s16, 4  ;;  %s2710_s23 = int_to_ptr.vmem [resolvable:$true] %s1446_s23 }
  0x21   : > { %1631 = vmatprep.subr.bf16.mxu0 %v1842_v22  ;;  %v357_v5 = vadd.s32 64, %v243_v53  ;;  %v509_v6 = vadd.s32 128, %v243_v53  ;;  %v359_v13 = vadd.s32 64, %v245_v54  ;;  %v511_v17 = vadd.s32 128, %v245_v54  ;;  %s1932_s7 = scalar_lea.vmem %s2710_s23, 2432  ;;  %p1939_p0 = scmp.lt.s32.totalorder %s2710_s23, %s1937_s9 }
  0x22   : > { %p1933_p11 = scmp.ne.s32.totalorder %s2710_s23, %s1932_s7  ;;  %p1940_p1 = scmp.lt.s32.totalorder %s1938_s10, %s1932_s7 }
  0x23   : > { %528 = vperm.xlu0 %1798, %v500_v16   ;;  %1799 = vset.pattern.permute.xlu1 %v1996_v0 }
  0x24   : > { %519 = vperm.xlu1 %1799, %v497_v19   ;;  %1632 = vmatpush3.bf16.msra.mxu0 %v1843_v23  ;;  %p1934_p12 = pnand %p1933_p11, %p2071_p5  ;;  %p1941_p2 = por %p1940_p1, %p1939_p0 }
  0x25   : > { %1633 = vmatprep.subr.bf16.mxu0 %v1844_v25 }
  0x26   : > { %p1935_p13 = pneg %p1934_p12 }
  0x27   : > { %1805 = vset.pattern.permute.xlu0 %v1998_v24 }
  0x28   : > { %250 = vperm.xlu0 %1805, %v230_v8   ;;  %1800 = vset.pattern.permute.xlu1 %v1998_v24  ;;  %p1942_p3 = pnand %p1941_p2, %p1935_p13 }
  0x29   : > { %256 = vperm.xlu1 %1800, %v232_v9   ;;  %1634 = vmatpush3.bf16.msra.mxu0 %v1845_v27  ;;  %v358_v9 = vadd.s32 64, %v244_v48  ;;  %v2777_v27 = vmov 0 }
  0x2a   : > { %1635 = vmatprep.subr.bf16.mxu0 %v1846_v29  ;;  %v360_v29 = vadd.s32 64, %v2175_v56 }
  0x2c   : > { %253 = vperm.xlu0 %1805, %v231_v10   ;;  %v227_v10 = vlaneseq }
  0x2d   : > { %1801 = vset.pattern.permute.xlu1 %v1997_v1  ;;  %1636 = vmatpush3.bf16.msra.mxu0 %v1847_v31 }
  0x2e   : > { %370 = vperm.xlu1 %1801, %v346_v26   ;;  %v2199_v14 = vand.u32 127, %v227_v10 }
  0x30   : > { %259 = vperm.xlu0 %1805, %v233_v28   ;;  %v2204_v18 = vadd.s32 128, %v2199_v14 }
  0x32   : > { %373 = vperm.xlu1 %1801, %v347_v30  }
  0x34   : > { %265 = vperm.xlu0 %1805, %v235_v32   ;;  %v361_v32 = vadd.s32 64, %v2170_v55 }
  0x36   : > { %1802 = vset.pattern.permute.xlu1 %v1996_v0 }
  0x37   : > { %525 = vperm.xlu1 %1802, %v499_v33   ;;  %v1999_v33 = vmov 1.0|1.0  }
  0x38   : > { %271 = vperm.xlu0 %1805, %v237_v34   ;;  %v513_v34 = vadd.s32 128, %v2170_v55 }
  0x3b   : > { %1803 = vset.pattern.permute.xlu1 %v1998_v24 }
  0x3c   : > { %262 = vperm.xlu1 %1803, %v234_v15   ;;  %277 = vperm.xlu0 %1805, %v239_v35  }
  0x40   : > { %1804 = vset.pattern.permute.xlu1 %v1997_v1  ;;  %283 = vperm.xlu0 %1805, %v2152_v37  }
  0x41   : > { %376 = vperm.xlu1 %1804, %v348_v36  }
  0x44   : > { %1814 = vset.pattern.permute.xlu0 %v1996_v0 }
  0x45   : > { %379 = vperm.xlu1 %1804, %v349_v39   ;;  %534 = vperm.xlu0 %1814, %v502_v40  }
  0x49   : > { %1806 = vset.pattern.permute.xlu1 %v1996_v0  ;;  %540 = vperm.xlu0 %1814, %v504_v42  }
  0x4a   : > { %531 = vperm.xlu1 %1806, %v501_v43   ;;  %v1849_v43 = vld [vmem:[%s2766_s3 + $0x8] sm:$0xff]  }
  0x4d   : > { %546 = vperm.xlu0 %1814, %v506_v45  }
  0x4e   : > { %1807 = vset.pattern.permute.xlu1 %v1998_v24 }
  0x4f   : > { %268 = vperm.xlu1 %1807, %v236_v38   ;;  %v514_v38 = vadd.s32 128, %v2179_v59 }
  0x51   : > { %552 = vperm.xlu0 %1814, %v508_v47  }
  0x53   : > { %1808 = vset.pattern.permute.xlu1 %v1997_v1 }
  0x54   : > { %382 = vperm.xlu1 %1808, %v350_v49  }
  0x55   : > { %558 = vperm.xlu0 %1814, %v510_v50  }
  0x58   : > { %385 = vperm.xlu1 %1808, %v351_v51  }
  0x59   : > { %1822 = vset.pattern.permute.xlu0 %v1998_v24 }
  0x5a   : > { %289 = vperm.xlu0 %1822, %v243_v53  }
  0x5c   : > { %1809 = vset.pattern.permute.xlu1 %v1996_v0 }
  0x5d   : > { %537 = vperm.xlu1 %1809, %v503_v52  }
  0x5e   : > { %295 = vperm.xlu0 %1822, %v245_v54  }
  0x61   : > { %1810 = vset.pattern.permute.xlu1 %v1998_v24 }
  0x62   : > { %274 = vperm.xlu1 %1810, %v238_v41   ;;  %301 = vperm.xlu0 %1822, %v2170_v55  }
  0x66   : > { %1811 = vset.pattern.permute.xlu1 %v1997_v1  ;;  %1826 = vset.pattern.permute.xlu0 %v1996_v0 }
  0x67   : > { %388 = vperm.xlu1 %1811, %v352_v57   ;;  %564 = vperm.xlu0 %1826, %v512_v58  }
  0x6b   : > { %391 = vperm.xlu1 %1811, %v353_v60   ;;  %1829 = vset.pattern.permute.xlu0 %v1997_v1 }
  0x6c   : > { %418 = vperm.xlu0 %1829, %v362_v61  }
  0x6f   : > { %1812 = vset.pattern.permute.xlu1 %v1996_v0 }
  0x70   : > { %543 = vperm.xlu1 %1812, %v505_v62   ;;  %1831 = vset.pattern.permute.xlu0 %v1996_v0 }
  0x74   : > { %1813 = vset.pattern.permute.xlu1 %v1998_v24 }
  0x75   : > { %280 = vperm.xlu1 %1813, %v240_v44  }
  0x79   : > { %1815 = vset.pattern.permute.xlu1 %v1997_v1 }
  0x7a   : > { %394 = vperm.xlu1 %1815, %v354_v63  }
  0x7e   : > { %397 = vperm.xlu1 %1815, %v355_v2  }
  0x82   : > { %1816 = vset.pattern.permute.xlu1 %v1996_v0 }
  0x83   : > { %549 = vperm.xlu1 %1816, %v507_v3   ;;  %v1851_v3 = vld [vmem:[%s2766_s3 + $0x18] sm:$0xff]  }
  0x87   : > { %1817 = vset.pattern.permute.xlu1 %v1998_v24 }
  0x88   : > { %286 = vperm.xlu1 %1817, %v242_v46   ;;  %v1850_v46 = vld [vmem:[%s2766_s3 + $0x10] sm:$0xff]  }
  0x8c   : > { %1818 = vset.pattern.permute.xlu1 %v1997_v1 }
  0x8d   : > { %400 = vperm.xlu1 %1818, %v356_v4  }
  0x91   : > { %403 = vperm.xlu1 %1818, %v357_v5   ;;  %v1852_v5 = vld [vmem:[%s2766_s3 + $0x20] sm:$0xff]  }
  0x95   : > { %1819 = vset.pattern.permute.xlu1 %v1996_v0 }
  0x96   : > { %555 = vperm.xlu1 %1819, %v509_v6  }
  0x9a   : > { %1820 = vset.pattern.permute.xlu1 %v1998_v24  ;;  %v365_v7 = vpop.permute.xlu1 %364  ;;  %v517_v8 = vpop.permute.xlu0 %516 }
  0x9b   : > { %292 = vperm.xlu1 %1820, %v244_v48   ;;  %vm420_vm0 = vcmp.eq.s32.totalorder %v2199_v14, %v365_v7  ;;  %vm572_vm1 = vcmp.eq.s32.totalorder %v2199_v14, %v517_v8  ;;  %vm573_vm4 = vcmp.eq.s32.totalorder %v2204_v18, %v517_v8  ;;  %vm421_vm6 = vcmp.eq.s32.totalorder %v2204_v18, %v365_v7  ;;  %v1853_v8 = vld [vmem:[%s2766_s3 + $0x28] sm:$0xff]  }
  0x9e   : > { %v368_v11 = vpop.permute.xlu1 %367  ;;  %v2196_v12 = vpop.permute.xlu0 %522 }
  0x9f   : > { %1821 = vset.pattern.permute.xlu1 %v1997_v1  ;;  %vm422_vm9 = vcmp.eq.s32.totalorder %v2199_v14, %v368_v11 }
  0xa0   : > { %406 = vperm.xlu1 %1821, %v358_v9  }
  0xa2   : > { %v2201_v15 = vpop.permute.xlu0 %528 }
  0xa3   : > { %v520_v16 = vpop.permute.xlu1 %519 }
  0xa4   : > { %409 = vperm.xlu1 %1821, %v359_v13   ;;  %vm574_vm12 = vcmp.eq.s32.totalorder %v2199_v14, %v520_v16 }
  0xa7   : > { %v251_v19 = vpop.permute.xlu0 %250 }
  0xa8   : > { %vm306_vm2 = vcmp.eq.s32.totalorder %v2199_v14, %v251_v19  ;;  %vm307_vm3 = vcmp.eq.s32.totalorder %v2204_v18, %v251_v19  ;;  %1823 = vset.pattern.permute.xlu1 %v1996_v0  ;;  %v257_v20 = vpop.permute.xlu1 %256 }
  0xa9   : > { %vm458_vm5 = vmor %vm306_vm2, %vm420_vm0  ;;  %561 = vperm.xlu1 %1823, %v511_v17   ;;  %vm310_vm14 = vcmp.eq.s32.totalorder %v2199_v14, %v257_v20 }
  0xaa   : > { %vm2213_vm7 = vmor %vm458_vm5, %vm572_vm1 }
  0xab   : > { %v254_v22 = vpop.permute.xlu0 %253  ;;  %vm459_vm8 = vmor %vm307_vm3, %vm421_vm6  ;;  %vm311_vm3 = vcmp.eq.s32.totalorder %v2204_v18, %v257_v20  ;;  %vm423_vm6 = vcmp.eq.s32.totalorder %v2204_v18, %v368_v11  ;;  %v1854_v11 = vld [vmem:[%s2766_s3 + $0x30] sm:$0xff]  }
  0xac   : > { %vm308_vm10 = vcmp.eq.s32.totalorder %v2199_v14, %v254_v22  ;;  %vm2219_vm11 = vmor %vm459_vm8, %vm573_vm4  ;;  %vm309_vm15 = vcmp.eq.s32.totalorder %v2204_v18, %v254_v22 }
  0xad   : > { %vm460_vm13 = vmor %vm308_vm10, %vm422_vm9  ;;  %1824 = vset.pattern.permute.xlu1 %v1998_v24  ;;  %v371_v25 = vpop.permute.xlu1 %370  ;;  %vm575_vm9 = vcmp.eq.s32.totalorder %v2204_v18, %v520_v16 }
  0xae   : > { %vm2227_vm0 = vmor %vm460_vm13, %vm574_vm12  ;;  %vm424_vm1 = vcmp.eq.s32.totalorder %v2199_v14, %v371_v25  ;;  %vm425_vm2 = vcmp.eq.s32.totalorder %v2204_v18, %v371_v25  ;;  %298 = vperm.xlu1 %1824, %v2175_v56  }
  0xaf   : > { %vm2235_vm4 = vmor %vm310_vm14, %vm424_vm1  ;;  %v260_v28 = vpop.permute.xlu0 %259 }
  0xb0   : > { %v2778_v27 = vsel %vm2235_vm4, 4294967295, %v2777_v27  ;;  %vm2240_vm5 = vmor %vm311_vm3, %vm425_vm2  ;;  %vm312_vm12 = vcmp.eq.s32.totalorder %v2199_v14, %v260_v28  ;;  %vm313_vm1 = vcmp.eq.s32.totalorder %v2204_v18, %v260_v28 }
  0xb1   : > { %vm461_vm8 = vmor %vm309_vm15, %vm423_vm6  ;;  %v374_v31 = vpop.permute.xlu1 %373  ;;  %vm577_vm15 = vcmp.eq.s32.totalorder %v2204_v18, %v2196_v12 }
  0xb2   : > { %vm613_vm10 = vmor %vm461_vm8, %vm575_vm9  ;;  %vm426_vm13 = vcmp.eq.s32.totalorder %v2199_v14, %v374_v31  ;;  %1825 = vset.pattern.permute.xlu1 %v1997_v1  ;;  %vm427_vm2 = vcmp.eq.s32.totalorder %v2204_v18, %v374_v31  ;;  %vm576_vm8 = vcmp.eq.s32.totalorder %v2199_v14, %v2196_v12  ;;  %v1855_v12 = vld [vmem:[%s2766_s3 + $0x38] sm:$0xff]  }
  0xb3   : > { %vm1568_vm14 = vmpackc.low %vm613_vm10, %vm2219_vm11  ;;  %412 = vperm.xlu1 %1825, %v360_v29   ;;  %v266_v36 = vpop.permute.xlu0 %265 }
  0xb4   : > { %1569 = vmatprep.mubr.msk.bf16.mxu0 %vm1568_vm14, %v1999_v33  ;;  %vm1570_vm3 = vmpackc.low %vm2227_vm0, %vm2213_vm7  ;;  %vm2781_vm0 = vnez %v2778_v27 }
  0xb5   : > { %1571 = vmatmul.mubr.msk.bf16.vlgmr.msra.gmra.mrb[0].mxu0 %vm1570_vm3, %v1999_v33  ;;  %vm464_vm11 = vmor %vm312_vm12, %vm426_vm13 }
  0xb6   : > { %vm465_vm6 = vmor %vm313_vm1, %vm427_vm2  ;;  %v526_v1 = vpop.permute.xlu1 %525 }
  0xb7   : > { %vm579_vm9 = vcmp.eq.s32.totalorder %v2204_v18, %v526_v1  ;;  %415 = vperm.xlu1 %1825, %v361_v32   ;;  %vm615_vm10 = vmor %vm2240_vm5, %vm577_vm15  ;;  %vm578_vm14 = vcmp.eq.s32.totalorder %v2199_v14, %v526_v1  ;;  %v272_v39 = vpop.permute.xlu0 %271  ;;  %vm580_vm15 = vcmp.eq.s32.totalorder %v2199_v14, %v2201_v15 }
  0xb8   : > { %vm617_vm4 = vmor %vm465_vm6, %vm579_vm9  ;;  %vm581_vm6 = vcmp.eq.s32.totalorder %v2204_v18, %v2201_v15  ;;  %vm316_vm9 = vcmp.eq.s32.totalorder %v2199_v14, %v266_v36 }
  0xb9   : > { %vm1572_vm7 = vmpackc.low %vm617_vm4, %vm615_vm10 }
  0xba   : > { %1573 = vmatprep.mubr.msk.bf16.mxu0 %vm1572_vm7, %v1999_v33  ;;  %vm614_vm12 = vmor %vm2781_vm0, %vm576_vm8  ;;  %vm317_vm7 = vcmp.eq.s32.totalorder %v2204_v18, %v266_v36 }
  0xbb   : > { %1827 = vset.pattern.permute.xlu1 %v1996_v0  ;;  %vm616_vm13 = vmor %vm464_vm11, %vm578_vm14  ;;  %v263_v35 = vpop.permute.xlu1 %262  ;;  %v2294_v41 = vpop.permute.xlu0 %277 }
  0xbc   : > { %vm1574_vm1 = vmpackc.low %vm616_vm13, %vm614_vm12  ;;  %567 = vperm.xlu1 %1827, %v513_v34   ;;  %vm314_vm2 = vcmp.eq.s32.totalorder %v2199_v14, %v263_v35  ;;  %vm315_vm3 = vcmp.eq.s32.totalorder %v2204_v18, %v263_v35  ;;  %v2451_v34 = vld [vmem:[%s2765_s2] ss:$0 sm:$0xff] }
  0xbd   : > { %1575 = vmatmul.mubr.msk.bf16.gmra.mrb[4].mxu0 %vm1574_vm1, %v1999_v33 }
  0xbf   : > { %v2307_v45 = vpop.permute.xlu0 %283 }
  0xc0   : > { %1828 = vset.pattern.permute.xlu1 %v1998_v24  ;;  %v377_v37 = vpop.permute.xlu1 %376 }
  0xc1   : > { %vm428_vm5 = vcmp.eq.s32.totalorder %v2199_v14, %v377_v37  ;;  %304 = vperm.xlu1 %1828, %v2179_v59   ;;  %vm429_vm4 = vcmp.eq.s32.totalorder %v2204_v18, %v377_v37 }
  0xc2   : > { %vm466_vm11 = vmor %vm314_vm2, %vm428_vm5 }
  0xc3   : > { %vm467_vm8 = vmor %vm315_vm3, %vm429_vm4 }
  0xc4   : > { %v380_v40 = vpop.permute.xlu1 %379  ;;  %vm2288_vm14 = vmor %vm466_vm11, %vm580_vm15  ;;  %v535_v48 = vpop.permute.xlu0 %534 }
  0xc5   : > { %1830 = vset.pattern.permute.xlu1 %v1996_v0  ;;  %vm430_vm10 = vcmp.eq.s32.totalorder %v2199_v14, %v380_v40  ;;  %vm431_vm0 = vcmp.eq.s32.totalorder %v2204_v18, %v380_v40  ;;  %vm619_vm12 = vmor %vm467_vm8, %vm581_vm6  ;;  %v1848_v0 = vld [vmem:[%s2766_s3] sm:$0xff]  }
  0xc6   : > { %570 = vperm.xlu1 %1830, %v514_v38   ;;  %vm468_vm13 = vmor %vm316_vm9, %vm430_vm10  ;;  %1715 = vmatprep.subr.bf16.mxu1 %v1848_v0 }
  0xc7   : > { %vm469_vm1 = vmor %vm317_vm7, %vm431_vm0  ;;  %1716 = vmatpush3.bf16.msra.mxu1 %v1848_v0  ;;  %vm584_vm7 = vcmp.eq.s32.totalorder %v2199_v14, %v535_v48 }
  0xc8   : > { %1717 = vmatprep.subr.bf16.mxu1 %v1849_v43  ;;  %v541_v53 = vpop.permute.xlu0 %540 }
  0xc9   : > { %v532_v42 = vpop.permute.xlu1 %531 }
  0xca   : > { %vm582_vm5 = vcmp.eq.s32.totalorder %v2199_v14, %v532_v42  ;;  %vm583_vm4 = vcmp.eq.s32.totalorder %v2204_v18, %v532_v42 }
  0xcb   : > { %vm620_vm2 = vmor %vm468_vm13, %vm582_vm5  ;;  %1718 = vmatpush3.bf16.msra.mxu1 %v1849_v43  ;;  %vm320_vm13 = vcmp.eq.s32.totalorder %v2199_v14, %v272_v39  ;;  %vm321_vm5 = vcmp.eq.s32.totalorder %v2204_v18, %v272_v39 }
  0xcc   : > { %vm621_vm15 = vmor %vm469_vm1, %vm583_vm4  ;;  %1719 = vmatprep.subr.bf16.mxu1 %v1850_v46  ;;  %v547_v58 = vpop.permute.xlu0 %546 }
  0xcd   : > { %vm1576_vm3 = vmpackc.low %vm621_vm15, %vm619_vm12  ;;  %vm585_vm12 = vcmp.eq.s32.totalorder %v2204_v18, %v535_v48 }
  0xce   : > { %1577 = vmatprep.mubr.msk.bf16.mxu0 %vm1576_vm3, %v1999_v33  ;;  %vm1578_vm11 = vmpackc.low %vm620_vm2, %vm2288_vm14  ;;  %v269_v44 = vpop.permute.xlu1 %268 }
  0xcf   : > { %1579 = vmatmul.mubr.msk.bf16.gmra.mrb[8].mxu0 %vm1578_vm11, %v1999_v33  ;;  %vm318_vm9 = vcmp.eq.s32.totalorder %v2199_v14, %v269_v44  ;;  %1720 = vmatpush3.bf16.msra.mxu1 %v1850_v46  ;;  %vm319_vm10 = vcmp.eq.s32.totalorder %v2204_v18, %v269_v44 }
  0xd0   : > { %v553_v62 = vpop.permute.xlu0 %552  ;;  %1721 = vmatprep.subr.bf16.mxu1 %v1851_v3 }
  0xd3   : > { %v383_v47 = vpop.permute.xlu1 %382  ;;  %1722 = vmatpush3.bf16.msra.mxu1 %v1851_v3 }
  0xd4   : > { %vm432_vm6 = vcmp.eq.s32.totalorder %v2199_v14, %v383_v47  ;;  %vm433_vm8 = vcmp.eq.s32.totalorder %v2204_v18, %v383_v47  ;;  %v559_v2 = vpop.permute.xlu0 %558  ;;  %1723 = vmatprep.subr.bf16.mxu1 %v1852_v5 }
  0xd5   : > { %vm470_vm14 = vmor %vm318_vm9, %vm432_vm6 }
  0xd6   : > { %vm471_vm0 = vmor %vm319_vm10, %vm433_vm8 }
  0xd7   : > { %v386_v49 = vpop.permute.xlu1 %385  ;;  %vm622_vm4 = vmor %vm470_vm14, %vm584_vm7  ;;  %1724 = vmatpush3.bf16.msra.mxu1 %v1852_v5 }
  0xd8   : > { %vm434_vm1 = vcmp.eq.s32.totalorder %v2199_v14, %v386_v49  ;;  %vm435_vm2 = vcmp.eq.s32.totalorder %v2204_v18, %v386_v49  ;;  %vm623_vm15 = vmor %vm471_vm0, %vm585_vm12  ;;  %1725 = vmatprep.subr.bf16.mxu1 %v1853_v8 }
  0xd9   : > { %vm472_vm3 = vmor %vm320_vm13, %vm434_vm1  ;;  %v290_v6 = vpop.permute.xlu0 %289 }
  0xda   : > { %vm473_vm11 = vmor %vm321_vm5, %vm435_vm2  ;;  %vm588_vm2 = vcmp.eq.s32.totalorder %v2199_v14, %v541_v53 }
  0xdb   : > { %1726 = vmatpush3.bf16.msra.mxu1 %v1853_v8 }
  0xdc   : > { %v538_v50 = vpop.permute.xlu1 %537  ;;  %1727 = vmatprep.subr.bf16.mxu1 %v1854_v11 }
  0xdd   : > { %vm586_vm6 = vcmp.eq.s32.totalorder %v2199_v14, %v538_v50  ;;  %vm587_vm9 = vcmp.eq.s32.totalorder %v2204_v18, %v538_v50  ;;  %v296_v16 = vpop.permute.xlu0 %295 }
  0xde   : > { %vm624_vm8 = vmor %vm472_vm3, %vm586_vm6  ;;  %vm324_vm3 = vcmp.eq.s32.totalorder %v2199_v14, %v2294_v41  ;;  %vm325_vm6 = vcmp.eq.s32.totalorder %v2204_v18, %v2294_v41 }
  0xdf   : > { %vm625_vm10 = vmor %vm473_vm11, %vm587_vm9  ;;  %1728 = vmatpush3.bf16.msra.mxu1 %v1854_v11 }
  0xe0   : > { %vm1580_vm7 = vmpackc.low %vm625_vm10, %vm623_vm15  ;;  %1729 = vmatprep.subr.bf16.mxu1 %v1855_v12 }
  0xe1   : > { %1581 = vmatprep.mubr.msk.bf16.mxu0 %vm1580_vm7, %v1999_v33  ;;  %vm1582_vm14 = vmpackc.low %vm624_vm8, %vm622_vm4  ;;  %v275_v51 = vpop.permute.xlu1 %274  ;;  %vm589_vm4 = vcmp.eq.s32.totalorder %v2204_v18, %v541_v53  ;;  %v302_v22 = vpop.permute.xlu0 %301 }
  0xe2   : > { %1583 = vmatmul.mubr.msk.bf16.gmra.mrb[12].mxu0 %vm1582_vm14, %v1999_v33  ;;  %vm322_vm13 = vcmp.eq.s32.totalorder %v2199_v14, %v275_v51  ;;  %vm323_vm1 = vcmp.eq.s32.totalorder %v2204_v18, %v275_v51 }
  0xe3   : > { %1730 = vmatpush3.bf16.msra.mxu1 %v1855_v12 }
  0xe6   : > { %v389_v52 = vpop.permute.xlu1 %388  ;;  %v565_v25 = vpop.permute.xlu0 %564 }
  0xe7   : > { %vm436_vm0 = vcmp.eq.s32.totalorder %v2199_v14, %v389_v52  ;;  %vm437_vm12 = vcmp.eq.s32.totalorder %v2204_v18, %v389_v52 }
  0xe8   : > { %vm474_vm5 = vmor %vm322_vm13, %vm436_vm0 }
  0xe9   : > { %vm475_vm15 = vmor %vm323_vm1, %vm437_vm12 }
  0xea   : > { %v392_v54 = vpop.permute.xlu1 %391  ;;  %vm626_vm9 = vmor %vm474_vm5, %vm588_vm2 }
  0xeb   : > { %vm438_vm11 = vcmp.eq.s32.totalorder %v2199_v14, %v392_v54  ;;  %vm439_vm8 = vcmp.eq.s32.totalorder %v2204_v18, %v392_v54  ;;  %vm627_vm10 = vmor %vm475_vm15, %vm589_vm4  ;;  %v419_v29 = vpop.permute.xlu0 %418 }
  0xec   : > { %vm476_vm7 = vmor %vm324_vm3, %vm438_vm11 }
  0xed   : > { %vm477_vm14 = vmor %vm325_vm6, %vm439_vm8  ;;  %vm592_vm8 = vcmp.eq.s32.totalorder %v2199_v14, %v547_v58 }
  0xef   : > { %v544_v55 = vpop.permute.xlu1 %543 }
  0xf0   : > { %vm590_vm0 = vcmp.eq.s32.totalorder %v2199_v14, %v544_v55  ;;  %vm591_vm12 = vcmp.eq.s32.totalorder %v2204_v18, %v544_v55 }
  0xf1   : > { %vm628_vm13 = vmor %vm476_vm7, %vm590_vm0 }
  0xf2   : > { %vm629_vm1 = vmor %vm477_vm14, %vm591_vm12  ;;  %vm328_vm12 = vcmp.eq.s32.totalorder %v2199_v14, %v2307_v45 }
  0xf3   : > { %vm1584_vm2 = vmpackc.low %vm629_vm1, %vm627_vm10  ;;  %vm329_vm1 = vcmp.eq.s32.totalorder %v2204_v18, %v2307_v45 }
  0xf4   : > { %1585 = vmatprep.mubr.msk.bf16.mxu0 %vm1584_vm2, %v1999_v33  ;;  %vm1586_vm5 = vmpackc.low %vm628_vm13, %vm626_vm9  ;;  %v281_v56 = vpop.permute.xlu1 %280  ;;  %vm593_vm9 = vcmp.eq.s32.totalorder %v2204_v18, %v547_v58 }
  0xf5   : > { %1587 = vmatmul.mubr.msk.bf16.gmra.mrb[16].mxu0 %vm1586_vm5, %v1999_v33  ;;  %vm326_vm3 = vcmp.eq.s32.totalorder %v2199_v14, %v281_v56  ;;  %vm327_vm11 = vcmp.eq.s32.totalorder %v2204_v18, %v281_v56 }
  0xf9   : > { %v395_v57 = vpop.permute.xlu1 %394 }
  0xfa   : > { %vm440_vm4 = vcmp.eq.s32.totalorder %v2199_v14, %v395_v57  ;;  %vm441_vm15 = vcmp.eq.s32.totalorder %v2204_v18, %v395_v57 }
  0xfb   : > { %vm478_vm6 = vmor %vm326_vm3, %vm440_vm4 }
  0xfc   : > { %vm479_vm10 = vmor %vm327_vm11, %vm441_vm15 }
  0xfd   : > { %v398_v59 = vpop.permute.xlu1 %397  ;;  %vm2350_vm14 = vmor %vm478_vm6, %vm592_vm8 }
  0xfe   : > { %vm442_vm7 = vcmp.eq.s32.totalorder %v2199_v14, %v398_v59  ;;  %vm443_vm0 = vcmp.eq.s32.totalorder %v2204_v18, %v398_v59  ;;  %vm631_vm13 = vmor %vm479_vm10, %vm593_vm9 }
  0xff   : > { %vm480_vm2 = vmor %vm328_vm12, %vm442_vm7 }
 0x100   : > { %vm481_vm5 = vmor %vm329_vm1, %vm443_vm0  ;;  %vm596_vm0 = vcmp.eq.s32.totalorder %v2199_v14, %v553_v62 }
 0x102   : > { %v550_v61 = vpop.permute.xlu1 %549 }
 0x103   : > { %vm594_vm4 = vcmp.eq.s32.totalorder %v2199_v14, %v550_v61  ;;  %vm595_vm15 = vcmp.eq.s32.totalorder %v2204_v18, %v550_v61 }
 0x104   : > { %vm632_vm3 = vmor %vm480_vm2, %vm594_vm4  ;;  %vm332_vm2 = vcmp.eq.s32.totalorder %v2199_v14, %v290_v6 }
 0x105   : > { %vm633_vm11 = vmor %vm481_vm5, %vm595_vm15  ;;  %vm333_vm15 = vcmp.eq.s32.totalorder %v2204_v18, %v290_v6 }
 0x106   : > { %vm1588_vm6 = vmpackc.low %vm633_vm11, %vm631_vm13  ;;  %vm597_vm13 = vcmp.eq.s32.totalorder %v2204_v18, %v553_v62 }
 0x107   : > { %1589 = vmatprep.mubr.msk.bf16.mxu0 %vm1588_vm6, %v1999_v33  ;;  %vm1590_vm8 = vmpackc.low %vm632_vm3, %vm2350_vm14  ;;  %v287_v63 = vpop.permute.xlu1 %286 }
 0x108   : > { %1591 = vmatmul.mubr.msk.bf16.gmra.mrb[20].mxu0 %vm1590_vm8, %v1999_v33  ;;  %vm330_vm7 = vcmp.eq.s32.totalorder %v2199_v14, %v287_v63  ;;  %vm331_vm14 = vcmp.eq.s32.totalorder %v2204_v18, %v287_v63 }
 0x10c   : > { %v401_v4 = vpop.permute.xlu1 %400 }
 0x10d   : > { %vm444_vm10 = vcmp.eq.s32.totalorder %v2199_v14, %v401_v4  ;;  %vm445_vm9 = vcmp.eq.s32.totalorder %v2204_v18, %v401_v4 }
 0x10e   : > { %vm482_vm12 = vmor %vm330_vm7, %vm444_vm10 }
 0x10f   : > { %vm483_vm1 = vmor %vm331_vm14, %vm445_vm9 }
 0x110   : > { %v404_v7 = vpop.permute.xlu1 %403  ;;  %vm2382_vm4 = vmor %vm482_vm12, %vm596_vm0 }
 0x111   : > { %vm446_vm5 = vcmp.eq.s32.totalorder %v2199_v14, %v404_v7  ;;  %vm447_vm3 = vcmp.eq.s32.totalorder %v2204_v18, %v404_v7  ;;  %vm635_vm11 = vmor %vm483_vm1, %vm597_vm13 }
 0x112   : > { %vm484_vm6 = vmor %vm332_vm2, %vm446_vm5 }
 0x113   : > { %vm485_vm8 = vmor %vm333_vm15, %vm447_vm3  ;;  %vm600_vm3 = vcmp.eq.s32.totalorder %v2199_v14, %v559_v2 }
 0x115   : > { %v556_v10 = vpop.permute.xlu1 %555 }
 0x116   : > { %vm598_vm10 = vcmp.eq.s32.totalorder %v2199_v14, %v556_v10  ;;  %vm599_vm9 = vcmp.eq.s32.totalorder %v2204_v18, %v556_v10 }
 0x117   : > { %vm636_vm7 = vmor %vm484_vm6, %vm598_vm10 }
 0x118   : > { %vm637_vm14 = vmor %vm485_vm8, %vm599_vm9  ;;  %vm601_vm8 = vcmp.eq.s32.totalorder %v2204_v18, %v559_v2  ;;  %vm337_vm9 = vcmp.eq.s32.totalorder %v2204_v18, %v296_v16 }
 0x119   : > { %vm1592_vm0 = vmpackc.low %vm637_vm14, %vm635_vm11  ;;  %vm336_vm11 = vcmp.eq.s32.totalorder %v2199_v14, %v296_v16 }
 0x11a   : > { %1593 = vmatprep.mubr.msk.bf16.mxu0 %vm1592_vm0, %v1999_v33  ;;  %vm1594_vm12 = vmpackc.low %vm636_vm7, %vm2382_vm4  ;;  %v293_v13 = vpop.permute.xlu1 %292 }
 0x11b   : > { %1595 = vmatmul.mubr.msk.bf16.gmra.mrb[24].mxu0 %vm1594_vm12, %v1999_v33  ;;  %vm334_vm2 = vcmp.eq.s32.totalorder %v2199_v14, %v293_v13  ;;  %vm335_vm5 = vcmp.eq.s32.totalorder %v2204_v18, %v293_v13 }
 0x11f   : > { %v407_v15 = vpop.permute.xlu1 %406 }
 0x120   : > { %vm448_vm13 = vcmp.eq.s32.totalorder %v2199_v14, %v407_v15  ;;  %vm449_vm1 = vcmp.eq.s32.totalorder %v2204_v18, %v407_v15 }
 0x121   : > { %vm486_vm15 = vmor %vm334_vm2, %vm448_vm13 }
 0x122   : > { %vm487_vm4 = vmor %vm335_vm5, %vm449_vm1 }
 0x123   : > { %v410_v17 = vpop.permute.xlu1 %409  ;;  %vm2408_vm10 = vmor %vm486_vm15, %vm600_vm3 }
 0x124   : > { %vm450_vm6 = vcmp.eq.s32.totalorder %v2199_v14, %v410_v17  ;;  %vm451_vm7 = vcmp.eq.s32.totalorder %v2204_v18, %v410_v17  ;;  %vm639_vm14 = vmor %vm487_vm4, %vm601_vm8 }
 0x125   : > { %vm488_vm0 = vmor %vm336_vm11, %vm450_vm6 }
 0x126   : > { %vm489_vm12 = vmor %vm337_vm9, %vm451_vm7  ;;  %vm604_vm7 = vcmp.eq.s32.totalorder %v2199_v14, %v565_v25 }
 0x128   : > { %v562_v20 = vpop.permute.xlu1 %561 }
 0x129   : > { %vm602_vm13 = vcmp.eq.s32.totalorder %v2199_v14, %v562_v20  ;;  %vm603_vm1 = vcmp.eq.s32.totalorder %v2204_v18, %v562_v20 }
 0x12a   : > { %vm640_vm2 = vmor %vm488_vm0, %vm602_vm13 }
 0x12b   : > { %vm641_vm5 = vmor %vm489_vm12, %vm603_vm1  ;;  %vm340_vm1 = vcmp.eq.s32.totalorder %v2199_v14, %v302_v22 }
 0x12c   : > { %vm1596_vm3 = vmpackc.low %vm641_vm5, %vm639_vm14  ;;  %vm341_vm5 = vcmp.eq.s32.totalorder %v2204_v18, %v302_v22 }
 0x12d   : > { %1597 = vmatprep.mubr.msk.bf16.mxu0 %vm1596_vm3, %v1999_v33  ;;  %vm1598_vm15 = vmpackc.low %vm640_vm2, %vm2408_vm10  ;;  %v299_v21 = vpop.permute.xlu1 %298  ;;  %vm605_vm10 = vcmp.eq.s32.totalorder %v2204_v18, %v565_v25 }
 0x12e   : > { %1599 = vmatmul.mubr.msk.bf16.gmra.mrb[28].mxu0 %vm1598_vm15, %v1999_v33  ;;  %vm338_vm6 = vcmp.eq.s32.totalorder %v2199_v14, %v299_v21  ;;  %vm339_vm8 = vcmp.eq.s32.totalorder %v2204_v18, %v299_v21 }
 0x132   : > { %v413_v23 = vpop.permute.xlu1 %412 }
 0x133   : > { %vm452_vm4 = vcmp.eq.s32.totalorder %v2199_v14, %v413_v23  ;;  %vm453_vm11 = vcmp.eq.s32.totalorder %v2204_v18, %v413_v23 }
 0x134   : > { %vm490_vm9 = vmor %vm338_vm6, %vm452_vm4 }
 0x135   : > { %vm491_vm14 = vmor %vm339_vm8, %vm453_vm11 }
 0x136   : > { %v416_v26 = vpop.permute.xlu1 %415  ;;  %vm2427_vm12 = vmor %vm490_vm9, %vm604_vm7 }
 0x137   : > { %vm454_vm0 = vcmp.eq.s32.totalorder %v2199_v14, %v416_v26  ;;  %vm455_vm13 = vcmp.eq.s32.totalorder %v2204_v18, %v416_v26  ;;  %vm643_vm2 = vmor %vm491_vm14, %vm605_vm10  ;;  %vm456_vm14 = vcmp.eq.s32.totalorder %v2199_v14, %v419_v29 }
 0x138   : > { %vm492_vm3 = vmor %vm340_vm1, %vm454_vm0  ;;  %vm457_vm0 = vcmp.eq.s32.totalorder %v2204_v18, %v419_v29 }
 0x139   : > { %vm493_vm15 = vmor %vm341_vm5, %vm455_vm13 }
 0x13b   : > { %v568_v28 = vpop.permute.xlu1 %567 }
 0x13c   : > { %vm606_vm4 = vcmp.eq.s32.totalorder %v2199_v14, %v568_v28  ;;  %vm607_vm11 = vcmp.eq.s32.totalorder %v2204_v18, %v568_v28 }
 0x13d   : > { %vm644_vm6 = vmor %vm492_vm3, %vm606_vm4 }
 0x13e   : > { %vm645_vm8 = vmor %vm493_vm15, %vm607_vm11 }
 0x13f   : > { %vm1600_vm9 = vmpackc.low %vm645_vm8, %vm643_vm2 }
 0x140   : > { %1601 = vmatprep.mubr.msk.bf16.mxu0 %vm1600_vm9, %v1999_v33  ;;  %vm1602_vm7 = vmpackc.low %vm644_vm6, %vm2427_vm12  ;;  %v305_v30 = vpop.permute.xlu1 %304  ;;  %vm1203_vm6 = vcmp.lt.s32.totalorder %v2199_v14, 8 }
 0x141   : > { %1603 = vmatmul.mubr.msk.bf16.gmra.mrb[32].mxu0 %vm1602_vm7, %v1999_v33  ;;  %vm342_vm10 = vcmp.eq.s32.totalorder %v2199_v14, %v305_v30  ;;  %vm343_vm13 = vcmp.eq.s32.totalorder %v2204_v18, %v305_v30 }
 0x142   : > { %vm494_vm1 = vmor %vm342_vm10, %vm456_vm14 }
 0x143   : > { %vm495_vm2 = vmor %vm343_vm13, %vm457_vm0 }
 0x145   : > { %v571_v31 = vpop.permute.xlu1 %570 }
 0x146   : > { %vm608_vm5 = vcmp.eq.s32.totalorder %v2199_v14, %v571_v31  ;;  %vm609_vm3 = vcmp.eq.s32.totalorder %v2204_v18, %v571_v31 }
 0x147   : > { %vm646_vm15 = vmor %vm494_vm1, %vm608_vm5 }
 0x148   : > { %vm647_vm12 = vmor %vm495_vm2, %vm609_vm3 }
 0x149   : > { %vm1604_vm4 = vmpackc.low %vm647_vm12, %vm647_vm12 }
 0x14a   : > { %vm1606_vm11 = vmpackc.low %vm646_vm15, %vm646_vm15  ;;  %1605 = vmatprep.mubr.msk.bf16.mxu0 %vm1604_vm4, %v1999_v33 }
 0x14b   : > { %1607 = vmatmul.mubr.msk.bf16.gmra.mrb[36].mxu0 %vm1606_vm11, %v1999_v33 }
 0x188   : > { %v1637_v32 = vpop.f32.mrb[0].mxu0 }
 0x189   : > { %v1638_v1 = vpop.f32.mrb[1].mxu0 }
 0x18a   : > { %v1639_v35 = vadd.f32 %v1638_v1, %v1637_v32  ;;  %v1640_v36 = vpop.f32.mrb[2].mxu0 }
 0x18b   : > { %v1641_v37 = vpop.f32.mrb[3].mxu0 }
 0x18c   : > { %v1642_v38 = vadd.f32 %v1641_v37, %v1640_v36  ;;  %v914_v18 = vadd.f32 %v1639_v35, %v2451_v34 }
 0x18e   : > { %v917_v39 = vadd.f32 %v1642_v38, %v2451_v34  ;;  %v991_v24 = vmax.f32 %v914_v18, 0.0 }
 0x190   : > { %v1643_v40 = vpop.f32.mrb[4].mxu0  ;;  %v992_v41 = vmax.f32 %v917_v39, 0.0 }
 0x191   : > { %v1644_v42 = vpop.f32.mrb[5].mxu0 }
 0x192   : > { %v1645_v33 = vadd.f32 %v1644_v42, %v1643_v40  ;;  %v1646_v0 = vpop.f32.mrb[6].mxu0  ;;  %v1010_v43 = vpack.c.bf16 %v992_v41, %v991_v24 }
 0x193   : > { %v1647_v44 = vpop.f32.mrb[7].mxu0 }
 0x194   : > { %v922_v45 = vadd.f32 %v1645_v33, %v2451_v34  ;;  %1731 = vmatprep.mubr.bf16.mxu1 %v1010_v43  ;;  %v1648_v46 = vadd.f32 %v1647_v44, %v1646_v0 }
 0x196   : > { %v925_v47 = vadd.f32 %v1648_v46, %v2451_v34  ;;  %v993_v48 = vmax.f32 %v922_v45, 0.0 }
 0x198   : > { %v994_v49 = vmax.f32 %v925_v47, 0.0 }
 0x19a   : > { %v1011_v50 = vpack.c.bf16 %v994_v49, %v993_v48 }
 0x19c   : > { %1732 = vmatmul.mubr.bf16.vlgmr.msra.gmra.mrb[0].mxu1 %v1011_v50 }
 0x1a2   : > { %v1649_v51 = vpop.f32.mrb[8].mxu0 }
 0x1a3   : > { %v1650_v52 = vpop.f32.mrb[9].mxu0 }
 0x1a4   : > { %v1651_v53 = vadd.f32 %v1650_v52, %v1649_v51  ;;  %v1652_v54 = vpop.f32.mrb[10].mxu0 }
 0x1a5   : > { %v1653_v55 = vpop.f32.mrb[11].mxu0 }
 0x1a6   : > { %v930_v56 = vadd.f32 %v1651_v53, %v2451_v34  ;;  %v1654_v57 = vadd.f32 %v1653_v55, %v1652_v54 }
 0x1a8   : > { %v933_v58 = vadd.f32 %v1654_v57, %v2451_v34  ;;  %v995_v59 = vmax.f32 %v930_v56, 0.0 }
 0x1aa   : > { %v996_v60 = vmax.f32 %v933_v58, 0.0 }
 0x1ac   : > { %v1012_v61 = vpack.c.bf16 %v996_v60, %v995_v59 }
 0x1ae   : > { %1735 = vmatprep.mubr.bf16.mxu1 %v1012_v61 }
 0x1b5   : > { %v1655_v62 = vpop.f32.mrb[12].mxu0 }
 0x1b6   : > { %v1656_v63 = vpop.f32.mrb[13].mxu0 }
 0x1b7   : > { %v1657_v2 = vadd.f32 %v1656_v63, %v1655_v62  ;;  %v1658_v3 = vpop.f32.mrb[14].mxu0 }
 0x1b8   : > { %v1659_v4 = vpop.f32.mrb[15].mxu0 }
 0x1b9   : > { %v938_v5 = vadd.f32 %v1657_v2, %v2451_v34  ;;  %v1660_v6 = vadd.f32 %v1659_v4, %v1658_v3 }
 0x1bb   : > { %v941_v7 = vadd.f32 %v1660_v6, %v2451_v34  ;;  %v997_v8 = vmax.f32 %v938_v5, 0.0 }
 0x1bd   : > { %v998_v9 = vmax.f32 %v941_v7, 0.0 }
 0x1bf   : > { %v1013_v10 = vpack.c.bf16 %v998_v9, %v997_v8 }
 0x1c1   : > { %1736 = vmatmul.mubr.bf16.gmra.mrb[4].mxu1 %v1013_v10 }
 0x1c8   : > { %v1661_v11 = vpop.f32.mrb[16].mxu0 }
 0x1c9   : > { %v1662_v12 = vpop.f32.mrb[17].mxu0 }
 0x1ca   : > { %v1663_v13 = vadd.f32 %v1662_v12, %v1661_v11  ;;  %v1664_v15 = vpop.f32.mrb[18].mxu0  ;;  %v2475_v12 = vld [vmem:[%s2767_s4] ss:$0 sm:$0xff] }
 0x1cb   : > { %v1665_v16 = vpop.f32.mrb[19].mxu0 }
 0x1cc   : > { %v946_v17 = vadd.f32 %v1663_v13, %v2451_v34  ;;  %v1666_v19 = vadd.f32 %v1665_v16, %v1664_v15 }
 0x1ce   : > { %v949_v20 = vadd.f32 %v1666_v19, %v2451_v34  ;;  %v999_v21 = vmax.f32 %v946_v17, 0.0 }
 0x1d0   : > { %v1000_v22 = vmax.f32 %v949_v20, 0.0 }
 0x1d2   : > { %v1014_v23 = vpack.c.bf16 %v1000_v22, %v999_v21 }
 0x1d4   : > { %1739 = vmatprep.mubr.bf16.mxu1 %v1014_v23 }
 0x1db   : > { %v1667_v25 = vpop.f32.mrb[20].mxu0 }
 0x1dc   : > { %v1668_v26 = vpop.f32.mrb[21].mxu0 }
 0x1dd   : > { %v1669_v27 = vadd.f32 %v1668_v26, %v1667_v25  ;;  %v1670_v28 = vpop.f32.mrb[22].mxu0 }
 0x1de   : > { %v1671_v29 = vpop.f32.mrb[23].mxu0 }
 0x1df   : > { %v954_v30 = vadd.f32 %v1669_v27, %v2451_v34  ;;  %v1672_v31 = vadd.f32 %v1671_v29, %v1670_v28 }
 0x1e1   : > { %v957_v32 = vadd.f32 %v1672_v31, %v2451_v34  ;;  %v1001_v1 = vmax.f32 %v954_v30, 0.0 }
 0x1e3   : > { %v1002_v35 = vmax.f32 %v957_v32, 0.0 }
 0x1e5   : > { %v1015_v36 = vpack.c.bf16 %v1002_v35, %v1001_v1 }
 0x1e7   : > { %1740 = vmatmul.mubr.bf16.gmra.mrb[8].mxu1 %v1015_v36 }
 0x1ee   : > { %v1673_v37 = vpop.f32.mrb[24].mxu0 }
 0x1ef   : > { %v1674_v38 = vpop.f32.mrb[25].mxu0 }
 0x1f0   : > { %v1675_v18 = vadd.f32 %v1674_v38, %v1673_v37  ;;  %v1676_v39 = vpop.f32.mrb[26].mxu0 }
 0x1f1   : > { %v1677_v40 = vpop.f32.mrb[27].mxu0 }
 0x1f2   : > { %v962_v24 = vadd.f32 %v1675_v18, %v2451_v34  ;;  %v1678_v41 = vadd.f32 %v1677_v40, %v1676_v39 }
 0x1f4   : > { %v965_v42 = vadd.f32 %v1678_v41, %v2451_v34  ;;  %v1003_v33 = vmax.f32 %v962_v24, 0.0 }
 0x1f6   : > { %v1004_v0 = vmax.f32 %v965_v42, 0.0 }
 0x1f8   : > { %v1016_v43 = vpack.c.bf16 %v1004_v0, %v1003_v33 }
 0x1fa   : > { %1743 = vmatprep.mubr.bf16.mxu1 %v1016_v43 }
 0x201   : > { %v1679_v44 = vpop.f32.mrb[28].mxu0 }
 0x202   : > { %v1680_v45 = vpop.f32.mrb[29].mxu0 }
 0x203   : > { %v1681_v46 = vadd.f32 %v1680_v45, %v1679_v44  ;;  %v1682_v47 = vpop.f32.mrb[30].mxu0 }
 0x204   : > { %v1683_v48 = vpop.f32.mrb[31].mxu0 }
 0x205   : > { %v970_v49 = vadd.f32 %v1681_v46, %v2451_v34  ;;  %v1684_v50 = vadd.f32 %v1683_v48, %v1682_v47 }
 0x207   : > { %v973_v51 = vadd.f32 %v1684_v50, %v2451_v34  ;;  %v1005_v52 = vmax.f32 %v970_v49, 0.0 }
 0x209   : > { %v1006_v53 = vmax.f32 %v973_v51, 0.0 }
 0x20b   : > { %v1017_v54 = vpack.c.bf16 %v1006_v53, %v1005_v52 }
 0x20d   : > { %1744 = vmatmul.mubr.bf16.gmra.mrb[12].mxu1 %v1017_v54 }
 0x214   : > { %v1685_v55 = vpop.f32.mrb[32].mxu0 }
 0x215   : > { %v1686_v56 = vpop.f32.mrb[33].mxu0 }
 0x216   : > { %v1687_v57 = vadd.f32 %v1686_v56, %v1685_v55  ;;  %v1688_v58 = vpop.f32.mrb[34].mxu0 }
 0x217   : > { %v1689_v59 = vpop.f32.mrb[35].mxu0 }
 0x218   : > { %v978_v60 = vadd.f32 %v1687_v57, %v2451_v34  ;;  %v1690_v61 = vadd.f32 %v1689_v59, %v1688_v58 }
 0x21a   : > { %v981_v62 = vadd.f32 %v1690_v61, %v2451_v34  ;;  %v1007_v63 = vmax.f32 %v978_v60, 0.0 }
 0x21c   : > { %v1008_v2 = vmax.f32 %v981_v62, 0.0 }
 0x21e   : > { %v1691_v3 = vpop.f32.mrb[36].mxu0  ;;  %v1018_v4 = vpack.c.bf16 %v1008_v2, %v1007_v63 }
 0x21f   : > { %v1692_v5 = vpop.f32.mrb[37].mxu0 }
 0x220   : > { %v1693_v6 = vadd.f32 %v1692_v5, %v1691_v3  ;;  %v1694_v7 = vpop.f32.mrb[38].mxu0  ;;  %1747 = vmatprep.mubr.bf16.mxu1 %v1018_v4 }
 0x221   : > { %v1695_v8 = vpop.f32.mrb[39].mxu0 }
 0x222   : > { %v986_v9 = vadd.f32 %v1693_v6, %v2451_v34 }
 0x224   : > { %v1009_v10 = vmax.f32 %v986_v9, 0.0 }
 0x226   : > { %v1019_v11 = vpack.c.bf16 %v1009_v10, %v1009_v10 }
 0x228   : > { %1748 = vmatmul.mubr.bf16.gmra.mrb[16].mxu1 %v1019_v11 }
 0x26f   : > { %v1733_v13 = vpop.f32.mrb[0].mxu1 }
 0x270   : > { %v1134_v15 = vadd.f32 %v1733_v13, %v2475_v12  ;;  %v1125_v16 = vpop.f32.mrb[1].mxu1 }
 0x271   : > { %v1126_v17 = vadd.f32 %v2475_v12, %v1125_v16  ;;  %v1734_v19 = vpop.f32.mrb[2].mxu1 }
 0x272   : > { %v1128_v20 = vpop.f32.mrb[3].mxu1  ;;  %v2482_v34 = vsel %vm1203_vm6, %v1134_v15, -inf  ;;  %v1137_v21 = vadd.f32 %v1734_v19, %v2475_v12 }
 0x273   : > { %v1129_v22 = vadd.f32 %v2475_v12, %v1128_v20  ;;  %1227 = vmax.xlane.f32.xlu0 %v2482_v34  ;;  %v2489_v23 = vsel %vm1203_vm6, %v1126_v17, -inf }
 0x274   : > { %1223 = vmax.xlane.f32.xlu1 %v2489_v23  ;;  %v2499_v26 = vsel %vm1203_vm6, %v1137_v21, -inf }
 0x275   : > { %v2494_v25 = vsel %vm1203_vm6, %v1129_v22, -inf }
 0x277   : > { %1225 = vmax.xlane.f32.xlu0 %v2494_v25 }
 0x278   : > { %1229 = vmax.xlane.f32.xlu1 %v2499_v26 }
 0x294   : > { %v1737_v27 = vpop.f32.mrb[4].mxu1 }
 0x295   : > { %v1150_v28 = vadd.f32 %v1737_v27, %v2475_v12  ;;  %v1141_v29 = vpop.f32.mrb[5].mxu1 }
 0x296   : > { %v1738_v30 = vpop.f32.mrb[6].mxu1  ;;  %v1142_v31 = vadd.f32 %v2475_v12, %v1141_v29 }
 0x297   : > { %v1153_v32 = vadd.f32 %v1738_v30, %v2475_v12  ;;  %v1144_v1 = vpop.f32.mrb[7].mxu1  ;;  %v2507_v35 = vsel %vm1203_vm6, %v1150_v28, -inf }
 0x298   : > { %1235 = vmax.xlane.f32.xlu0 %v2507_v35  ;;  %v1145_v36 = vadd.f32 %v2475_v12, %v1144_v1  ;;  %v2518_v38 = vsel %vm1203_vm6, %v1142_v31, -inf }
 0x299   : > { %v2513_v37 = vsel %vm1203_vm6, %v1153_v32, -inf }
 0x29a   : > { %1237 = vmax.xlane.f32.xlu1 %v2513_v37  ;;  %v2523_v18 = vsel %vm1203_vm6, %v1145_v36, -inf }
 0x29c   : > { %1231 = vmax.xlane.f32.xlu0 %v2518_v38 }
 0x29e   : > { %1233 = vmax.xlane.f32.xlu1 %v2523_v18 }
 0x2ba   : > { %v1741_v39 = vpop.f32.mrb[8].mxu1 }
 0x2bb   : > { %v1166_v40 = vadd.f32 %v1741_v39, %v2475_v12  ;;  %v1157_v24 = vpop.f32.mrb[9].mxu1 }
 0x2bc   : > { %v1742_v41 = vpop.f32.mrb[10].mxu1  ;;  %v1158_v42 = vadd.f32 %v2475_v12, %v1157_v24 }
 0x2bd   : > { %v1169_v33 = vadd.f32 %v1742_v41, %v2475_v12  ;;  %v1160_v0 = vpop.f32.mrb[11].mxu1  ;;  %v2531_v43 = vsel %vm1203_vm6, %v1166_v40, -inf }
 0x2be   : > { %1243 = vmax.xlane.f32.xlu0 %v2531_v43  ;;  %v1161_v44 = vadd.f32 %v2475_v12, %v1160_v0  ;;  %v2542_v46 = vsel %vm1203_vm6, %v1158_v42, -inf }
 0x2bf   : > { %v2537_v45 = vsel %vm1203_vm6, %v1169_v33, -inf }
 0x2c0   : > { %1245 = vmax.xlane.f32.xlu1 %v2537_v45  ;;  %v2547_v47 = vsel %vm1203_vm6, %v1161_v44, -inf }
 0x2c2   : > { %1239 = vmax.xlane.f32.xlu0 %v2542_v46 }
 0x2c4   : > { %1241 = vmax.xlane.f32.xlu1 %v2547_v47 }
 0x2e0   : > { %v1745_v48 = vpop.f32.mrb[12].mxu1 }
 0x2e1   : > { %v1182_v49 = vadd.f32 %v1745_v48, %v2475_v12  ;;  %v1173_v50 = vpop.f32.mrb[13].mxu1 }
 0x2e2   : > { %v1746_v51 = vpop.f32.mrb[14].mxu1  ;;  %v1174_v52 = vadd.f32 %v2475_v12, %v1173_v50 }
 0x2e3   : > { %v1185_v53 = vadd.f32 %v1746_v51, %v2475_v12  ;;  %v1176_v54 = vpop.f32.mrb[15].mxu1  ;;  %v2555_v55 = vsel %vm1203_vm6, %v1182_v49, -inf }
 0x2e4   : > { %1251 = vmax.xlane.f32.xlu0 %v2555_v55  ;;  %v1177_v56 = vadd.f32 %v2475_v12, %v1176_v54  ;;  %v2566_v58 = vsel %vm1203_vm6, %v1174_v52, -inf }
 0x2e5   : > { %v2561_v57 = vsel %vm1203_vm6, %v1185_v53, -inf }
 0x2e6   : > { %1253 = vmax.xlane.f32.xlu1 %v2561_v57  ;;  %v2571_v59 = vsel %vm1203_vm6, %v1177_v56, -inf }
 0x2e8   : > { %1247 = vmax.xlane.f32.xlu0 %v2566_v58 }
 0x2ea   : > { %1249 = vmax.xlane.f32.xlu1 %v2571_v59 }
 0x2fb   : > { %v1749_v60 = vpop.f32.mrb[16].mxu1 }
 0x2fc   : > { %v1189_v61 = vpop.f32.mrb[17].mxu1  ;;  %v1198_v3 = vadd.f32 %v1749_v60, %v2475_v12 }
 0x2fd   : > { %v1190_v62 = vadd.f32 %v2475_v12, %v1189_v61  ;;  %v1750_v63 = vpop.f32.mrb[18].mxu1 }
 0x2fe   : > { %v1192_v2 = vpop.f32.mrb[19].mxu1 }
 0x2ff   : > { %v1193_v4 = vadd.f32 %v2475_v12, %v1192_v2  ;;  %v2579_v5 = vsel %vm1203_vm6, %v1190_v62, -inf  ;;  %v2596_v12 = vsel %vm1203_vm6, %v1198_v3, -inf }
 0x300   : > { %v1228_v6 = vpop.xlane.xlu0 %1227  ;;  %1255 = vmax.xlane.f32.xlu0 %v2579_v5 }
 0x301   : > { %v2583_v7 = vsub.f32 %v2482_v34, %v1228_v6  ;;  %v1224_v8 = vpop.xlane.xlu1 %1223  ;;  %v2587_v9 = vsel %vm1203_vm6, %v1193_v4, -inf }
 0x302   : > { %v2590_v10 = vsub.f32 %v2489_v23, %v1224_v8  ;;  %1257 = vmax.xlane.f32.xlu1 %v2587_v9 }
 0x303   : > { %v1284_v11 = vmul.f32 1.442695, %v2583_v7 }
 0x304   : > { %v1226_v13 = vpop.xlane.xlu0 %1225  ;;  %1259 = vmax.xlane.f32.xlu0 %v2596_v12  ;;  %v1280_v15 = vmul.f32 1.442695, %v2590_v10 }
 0x305   : > { %1856 = vpow2.f32 %v1284_v11  ;;  %v1230_v16 = vpop.xlane.xlu1 %1229  ;;  %v2601_v17 = vsub.f32 %v2494_v25, %v1226_v13 }
 0x306   : > { %v2604_v19 = vsub.f32 %v2499_v26, %v1230_v16  ;;  %1858 = vpow2.f32 %v1280_v15 }
 0x307   : > { %v1282_v14 = vmul.f32 1.442695, %v2601_v17 }
 0x308   : > { %v1286_v20 = vmul.f32 1.442695, %v2604_v19 }
 0x30a   : > { %1860 = vpow2.f32 %v1286_v20 }
 0x30b   : > { %1862 = vpow2.f32 %v1282_v14 }
 0x30f   : > { %v1857_v34 = vpop.eup %1856 }
 0x310   : > { %1322 = vadd.xlane.f32.xlu1 %v1857_v34  ;;  %v1859_v21 = vpop.eup %1858 }
 0x314   : > { %v1861_v22 = vpop.eup %1860  ;;  %1318 = vadd.xlane.f32.xlu1 %v1859_v21 }
 0x315   : > { %1324 = vadd.xlane.f32.xlu0 %v1861_v22  ;;  %v1863_v23 = vpop.eup %1862 }
 0x319   : > { %1320 = vadd.xlane.f32.xlu0 %v1863_v23 }
 0x325   : > { %v1236_v25 = vpop.xlane.xlu0 %1235 }
 0x326   : > { %v2609_v27 = vsub.f32 %v2507_v35, %v1236_v25 }
 0x327   : > { %v1238_v26 = vpop.xlane.xlu1 %1237 }
 0x328   : > { %v1292_v28 = vmul.f32 1.442695, %v2609_v27  ;;  %v2613_v29 = vsub.f32 %v2513_v37, %v1238_v26 }
 0x329   : > { %v1232_v30 = vpop.xlane.xlu0 %1231 }
 0x32a   : > { %1864 = vpow2.f32 %v1292_v28  ;;  %v1294_v31 = vmul.f32 1.442695, %v2613_v29  ;;  %v2617_v32 = vsub.f32 %v2518_v38, %v1232_v30 }
 0x32b   : > { %v1234_v1 = vpop.xlane.xlu1 %1233 }
 0x32c   : > { %1866 = vpow2.f32 %v1294_v31  ;;  %v1288_v36 = vmul.f32 1.442695, %v2617_v32  ;;  %v2621_v35 = vsub.f32 %v2523_v18, %v1234_v1 }
 0x32e   : > { %1868 = vpow2.f32 %v1288_v36  ;;  %v1290_v39 = vmul.f32 1.442695, %v2621_v35 }
 0x330   : > { %1870 = vpow2.f32 %v1290_v39 }
 0x334   : > { %v1865_v37 = vpop.eup %1864 }
 0x335   : > { %1330 = vadd.xlane.f32.xlu1 %v1865_v37 }
 0x336   : > { %v1867_v40 = vpop.eup %1866 }
 0x337   : > { %1332 = vadd.xlane.f32.xlu0 %v1867_v40 }
 0x338   : > { %v1869_v24 = vpop.eup %1868 }
 0x339   : > { %1326 = vadd.xlane.f32.xlu1 %v1869_v24 }
 0x33a   : > { %v1871_v41 = vpop.eup %1870 }
 0x33b   : > { %1328 = vadd.xlane.f32.xlu0 %v1871_v41 }
 0x34b   : > { %v1244_v38 = vpop.xlane.xlu0 %1243 }
 0x34c   : > { %v2625_v42 = vsub.f32 %v2531_v43, %v1244_v38 }
 0x34d   : > { %v1246_v33 = vpop.xlane.xlu1 %1245 }
 0x34e   : > { %v1300_v18 = vmul.f32 1.442695, %v2625_v42  ;;  %v2629_v0 = vsub.f32 %v2537_v45, %v1246_v33 }
 0x34f   : > { %v1240_v44 = vpop.xlane.xlu0 %1239 }
 0x350   : > { %1872 = vpow2.f32 %v1300_v18  ;;  %v1302_v48 = vmul.f32 1.442695, %v2629_v0  ;;  %v2633_v49 = vsub.f32 %v2542_v46, %v1240_v44 }
 0x351   : > { %v1242_v50 = vpop.xlane.xlu1 %1241 }
 0x352   : > { %1874 = vpow2.f32 %v1302_v48  ;;  %v1296_v51 = vmul.f32 1.442695, %v2633_v49  ;;  %v2637_v43 = vsub.f32 %v2547_v47, %v1242_v50 }
 0x354   : > { %1876 = vpow2.f32 %v1296_v51  ;;  %v1298_v52 = vmul.f32 1.442695, %v2637_v43 }
 0x356   : > { %1878 = vpow2.f32 %v1298_v52 }
 0x35a   : > { %v1873_v45 = vpop.eup %1872 }
 0x35b   : > { %1338 = vadd.xlane.f32.xlu1 %v1873_v45 }
 0x35c   : > { %v1875_v53 = vpop.eup %1874 }
 0x35d   : > { %1340 = vadd.xlane.f32.xlu0 %v1875_v53 }
 0x35e   : > { %v1877_v54 = vpop.eup %1876 }
 0x35f   : > { %1334 = vadd.xlane.f32.xlu1 %v1877_v54 }
 0x360   : > { %v1879_v56 = vpop.eup %1878 }
 0x361   : > { %1336 = vadd.xlane.f32.xlu0 %v1879_v56 }
 0x371   : > { %v1252_v46 = vpop.xlane.xlu0 %1251 }
 0x372   : > { %v2641_v60 = vsub.f32 %v2555_v55, %v1252_v46 }
 0x373   : > { %v1254_v61 = vpop.xlane.xlu1 %1253 }
 0x374   : > { %v1308_v47 = vmul.f32 1.442695, %v2641_v60  ;;  %v2645_v62 = vsub.f32 %v2561_v57, %v1254_v61 }
 0x375   : > { %v1248_v63 = vpop.xlane.xlu0 %1247 }
 0x376   : > { %1880 = vpow2.f32 %v1308_v47  ;;  %v1310_v2 = vmul.f32 1.442695, %v2645_v62  ;;  %v2649_v3 = vsub.f32 %v2566_v58, %v1248_v63 }
 0x377   : > { %v1250_v4 = vpop.xlane.xlu1 %1249 }
 0x378   : > { %1882 = vpow2.f32 %v1310_v2  ;;  %v1304_v6 = vmul.f32 1.442695, %v2649_v3  ;;  %v2653_v55 = vsub.f32 %v2571_v59, %v1250_v4 }
 0x37a   : > { %1884 = vpow2.f32 %v1304_v6  ;;  %v1306_v8 = vmul.f32 1.442695, %v2653_v55 }
 0x37c   : > { %1886 = vpow2.f32 %v1306_v8 }
 0x380   : > { %v1881_v57 = vpop.eup %1880 }
 0x381   : > { %1346 = vadd.xlane.f32.xlu1 %v1881_v57 }
 0x382   : > { %v1883_v11 = vpop.eup %1882 }
 0x383   : > { %1348 = vadd.xlane.f32.xlu0 %v1883_v11 }
 0x384   : > { %v1885_v13 = vpop.eup %1884 }
 0x385   : > { %1342 = vadd.xlane.f32.xlu1 %v1885_v13 }
 0x386   : > { %v1887_v15 = vpop.eup %1886 }
 0x387   : > { %1344 = vadd.xlane.f32.xlu0 %v1887_v15 }
 0x38d   : > { %v1256_v58 = vpop.xlane.xlu0 %1255 }
 0x38e   : > { %v2657_v16 = vsub.f32 %v2579_v5, %v1256_v58 }
 0x38f   : > { %v1258_v20 = vpop.xlane.xlu1 %1257 }
 0x390   : > { %v1312_v59 = vmul.f32 1.442695, %v2657_v16  ;;  %v2661_v14 = vsub.f32 %v2587_v9, %v1258_v20 }
 0x391   : > { %v1260_v34 = vpop.xlane.xlu0 %1259 }
 0x392   : > { %1888 = vpow2.f32 %v1312_v59  ;;  %v1314_v21 = vmul.f32 1.442695, %v2661_v14  ;;  %v2665_v22 = vsub.f32 %v2596_v12, %v1260_v34 }
 0x394   : > { %1890 = vpow2.f32 %v1314_v21  ;;  %v1316_v23 = vmul.f32 1.442695, %v2665_v22 }
 0x396   : > { %1892 = vpow2.f32 %v1316_v23 }
 0x39c   : > { %v1889_v5 = vpop.eup %1888 }
 0x39d   : > { %v1323_v25 = vpop.xlane.xlu1 %1322  ;;  %1350 = vadd.xlane.f32.xlu1 %v1889_v5 }
 0x39e   : > { %v1891_v26 = vpop.eup %1890  ;;  %1894 = vlog2.f32 %v1323_v25 }
 0x39f   : > { %1352 = vadd.xlane.f32.xlu0 %v1891_v26 }
 0x3a0   : > { %v1893_v9 = vpop.eup %1892 }
 0x3a1   : > { %v1319_v28 = vpop.xlane.xlu1 %1318  ;;  %1354 = vadd.xlane.f32.xlu1 %v1893_v9 }
 0x3a2   : > { %1896 = vlog2.f32 %v1319_v28  ;;  %v1325_v30 = vpop.xlane.xlu0 %1324 }
 0x3a3   : > { %1898 = vlog2.f32 %v1325_v30 }
 0x3a6   : > { %v1321_v12 = vpop.xlane.xlu0 %1320 }
 0x3a7   : > { %1900 = vlog2.f32 %v1321_v12 }
 0x3a8   : > { %v1895_v31 = vpop.eup %1894 }
 0x3a9   : > { %v1361_v1 = vmul.f32 0.6931472, %v1895_v31 }
 0x3ab   : > { %v1396_v36 = vsub.f32 %v2583_v7, %v1361_v1 }
 0x3ac   : > { %v1897_v39 = vpop.eup %1896 }
 0x3ad   : > { %v1899_v37 = vpop.eup %1898  ;;  %1415 = vst [vmem:[%s2672_s16 + $0x10] sm:$0xff] %v1396_v36  ;;  %v1357_v40 = vmul.f32 0.6931472, %v1897_v39 }
 0x3ae   : > { %v1363_v24 = vmul.f32 0.6931472, %v1899_v37 }
 0x3af   : > { %v1394_v41 = vsub.f32 %v2590_v10, %v1357_v40 }
 0x3b0   : > { %v1397_v38 = vsub.f32 %v2604_v19, %v1363_v24 }
 0x3b1   : > { %v1901_v33 = vpop.eup %1900  ;;  %1413 = vst [vmem:[%s2672_s16] sm:$0xff] %v1394_v41 }
 0x3b2   : > { %1416 = vst [vmem:[%s2672_s16 + $0x18] sm:$0xff] %v1397_v38  ;;  %v1359_v18 = vmul.f32 0.6931472, %v1901_v33 }
 0x3b4   : > { %v1395_v7 = vsub.f32 %v2601_v17, %v1359_v18 }
 0x3b6   : > { %1414 = vst [vmem:[%s2672_s16 + $0x8] sm:$0xff] %v1395_v7 }
 0x3c2   : > { %v1331_v44 = vpop.xlane.xlu1 %1330 }
 0x3c3   : > { %1902 = vlog2.f32 %v1331_v44 }
 0x3c4   : > { %v1333_v48 = vpop.xlane.xlu0 %1332 }
 0x3c5   : > { %1904 = vlog2.f32 %v1333_v48 }
 0x3c6   : > { %v1327_v50 = vpop.xlane.xlu1 %1326 }
 0x3c7   : > { %1906 = vlog2.f32 %v1327_v50 }
 0x3c8   : > { %v1329_v51 = vpop.xlane.xlu0 %1328 }
 0x3c9   : > { %1908 = vlog2.f32 %v1329_v51 }
 0x3cd   : > { %v1903_v10 = vpop.eup %1902 }
 0x3ce   : > { %v1369_v19 = vmul.f32 0.6931472, %v1903_v10 }
 0x3cf   : > { %v1905_v52 = vpop.eup %1904 }
 0x3d0   : > { %v1400_v45 = vsub.f32 %v2609_v27, %v1369_v19  ;;  %v1371_v53 = vmul.f32 0.6931472, %v1905_v52 }
 0x3d1   : > { %v1907_v17 = vpop.eup %1906 }
 0x3d2   : > { %1419 = vst [vmem:[%s2672_s16 + $0x30] sm:$0xff] %v1400_v45  ;;  %v1401_v54 = vsub.f32 %v2613_v29, %v1371_v53  ;;  %v1365_v56 = vmul.f32 0.6931472, %v1907_v17 }
 0x3d3   : > { %v1909_v46 = vpop.eup %1908 }
 0x3d4   : > { %1420 = vst [vmem:[%s2672_s16 + $0x38] sm:$0xff] %v1401_v54  ;;  %v1398_v61 = vsub.f32 %v2617_v32, %v1365_v56  ;;  %v1367_v47 = vmul.f32 0.6931472, %v1909_v46 }
 0x3d6   : > { %1417 = vst [vmem:[%s2672_s16 + $0x20] sm:$0xff] %v1398_v61  ;;  %v1399_v63 = vsub.f32 %v2621_v35, %v1367_v47 }
 0x3d8   : > { %1418 = vst [vmem:[%s2672_s16 + $0x28] sm:$0xff] %v1399_v63 }
 0x3e8   : > { %v1339_v2 = vpop.xlane.xlu1 %1338 }
 0x3e9   : > { %1910 = vlog2.f32 %v1339_v2 }
 0x3ea   : > { %v1341_v4 = vpop.xlane.xlu0 %1340 }
 0x3eb   : > { %1912 = vlog2.f32 %v1341_v4 }
 0x3ec   : > { %v1335_v27 = vpop.xlane.xlu1 %1334 }
 0x3ed   : > { %1914 = vlog2.f32 %v1335_v27 }
 0x3ee   : > { %v1337_v29 = vpop.xlane.xlu0 %1336 }
 0x3ef   : > { %1916 = vlog2.f32 %v1337_v29 }
 0x3f3   : > { %v1911_v6 = vpop.eup %1910 }
 0x3f4   : > { %v1377_v8 = vmul.f32 0.6931472, %v1911_v6 }
 0x3f5   : > { %v1913_v32 = vpop.eup %1912 }
 0x3f6   : > { %v1404_v57 = vsub.f32 %v2625_v42, %v1377_v8  ;;  %v1379_v11 = vmul.f32 0.6931472, %v1913_v32 }
 0x3f7   : > { %v1915_v35 = vpop.eup %1914 }
 0x3f8   : > { %1423 = vst [vmem:[%s2672_s16 + $0x50] sm:$0xff] %v1404_v57  ;;  %v1405_v13 = vsub.f32 %v2629_v0, %v1379_v11  ;;  %v1373_v15 = vmul.f32 0.6931472, %v1915_v35 }
 0x3f9   : > { %v1917_v58 = vpop.eup %1916 }
 0x3fa   : > { %1424 = vst [vmem:[%s2672_s16 + $0x58] sm:$0xff] %v1405_v13  ;;  %v1402_v20 = vsub.f32 %v2633_v49, %v1373_v15  ;;  %v1375_v59 = vmul.f32 0.6931472, %v1917_v58 }
 0x3fc   : > { %1421 = vst [vmem:[%s2672_s16 + $0x40] sm:$0xff] %v1402_v20  ;;  %v1403_v34 = vsub.f32 %v2637_v43, %v1375_v59 }
 0x3fe   : > { %1422 = vst [vmem:[%s2672_s16 + $0x48] sm:$0xff] %v1403_v34 }
 0x40e   : > { %v1347_v21 = vpop.xlane.xlu1 %1346 }
 0x40f   : > { %1918 = vlog2.f32 %v1347_v21 }
 0x410   : > { %v1349_v23 = vpop.xlane.xlu0 %1348 }
 0x411   : > { %1920 = vlog2.f32 %v1349_v23 }
 0x412   : > { %v1343_v42 = vpop.xlane.xlu1 %1342 }
 0x413   : > { %1922 = vlog2.f32 %v1343_v42 }
 0x414   : > { %v1345_v0 = vpop.xlane.xlu0 %1344 }
 0x415   : > { %1924 = vlog2.f32 %v1345_v0 }
 0x419   : > { %v1919_v5 = vpop.eup %1918 }
 0x41a   : > { %v1385_v25 = vmul.f32 0.6931472, %v1919_v5 }
 0x41b   : > { %v1921_v49 = vpop.eup %1920 }
 0x41c   : > { %v1408_v26 = vsub.f32 %v2641_v60, %v1385_v25  ;;  %v1387_v9 = vmul.f32 0.6931472, %v1921_v49 }
 0x41d   : > { %v1923_v43 = vpop.eup %1922 }
 0x41e   : > { %1427 = vst [vmem:[%s2672_s16 + $0x70] sm:$0xff] %v1408_v26  ;;  %v1409_v28 = vsub.f32 %v2645_v62, %v1387_v9  ;;  %v1381_v30 = vmul.f32 0.6931472, %v1923_v43 }
 0x41f   : > { %v1925_v12 = vpop.eup %1924 }
 0x420   : > { %1428 = vst [vmem:[%s2672_s16 + $0x78] sm:$0xff] %v1409_v28  ;;  %v1406_v31 = vsub.f32 %v2649_v3, %v1381_v30  ;;  %v1383_v1 = vmul.f32 0.6931472, %v1925_v12 }
 0x422   : > { %1425 = vst [vmem:[%s2672_s16 + $0x60] sm:$0xff] %v1406_v31  ;;  %v1407_v36 = vsub.f32 %v2653_v55, %v1383_v1 }
 0x424   : > { %1426 = vst [vmem:[%s2672_s16 + $0x68] sm:$0xff] %v1407_v36 }
 0x42a   : > { %v1351_v39 = vpop.xlane.xlu1 %1350 }
 0x42b   : > { %1926 = vlog2.f32 %v1351_v39 }
 0x42c   : > { %v1353_v60 = vpop.xlane.xlu0 %1352 }
 0x42d   : > { %1928 = vlog2.f32 %v1353_v60 }
 0x42e   : > { %v1355_v37 = vpop.xlane.xlu1 %1354 }
 0x42f   : > { %1930 = vlog2.f32 %v1355_v37 }
 0x435   : > { %v1927_v62 = vpop.eup %1926 }
 0x436   : > { %v1389_v40 = vmul.f32 0.6931472, %v1927_v62 }
 0x437   : > { %v1929_v3 = vpop.eup %1928 }
 0x438   : > { %v1410_v24 = vsub.f32 %v2657_v16, %v1389_v40  ;;  %v1391_v41 = vmul.f32 0.6931472, %v1929_v3 }
 0x439   : > { %v1931_v55 = vpop.eup %1930 }
 0x43a   : > { %1429 = vst [vmem:[%s2672_s16 + $0x80] sm:$0xff] %v1410_v24  ;;  %v1411_v38 = vsub.f32 %v2661_v14, %v1391_v41  ;;  %v1393_v33 = vmul.f32 0.6931472, %v1931_v55 }
 0x43c   : > { %1430 = vst [vmem:[%s2672_s16 + $0x88] sm:$0xff] %v1411_v38  ;;  %v1412_v18 = vsub.f32 %v2665_v22, %v1393_v33 }
 0x43e   : > { %1431 = vst [vmem:[%s2672_s16 + $0x90] sm:$0xff] %v1412_v18 }
 0x43f   : > { %1945 = shalt.err (!%p1942_p3)
}
 0x440   : > { %s1946_s25 = scalar_lea.hbm %s2717_s30, 2432  ;;  %s1950_s13 = scalar_lea.hbm %s2768_s5, 4864 }
 0x441   : > { %p1947_p4 = scmp.ne.s32.totalorder %s2717_s30, %s1946_s25  ;;  %p1951_p9 = scmp.lt.u32.totalorder %s2717_s30, %s2768_s5 }
 0x442   : > { %p1952_p10 = scmp.lt.u32.totalorder %s1950_s13, %s1946_s25  ;;  %p1954_p12 = scmp.lt.u32.totalorder %s1946_s25, %s2717_s30 }
 0x443   : > { %p1948_p7 = pnand %p1947_p4, %p2071_p5 }
 0x444   : > { %p1953_p11 = por %p1952_p10, %p1951_p9 }
 0x445   : > { %p1949_p8 = pneg %p1948_p7 }
 0x446   : > { %p1955_p13 = por %p1954_p12, %p1953_p11 }
 0x448   : > { %p1956_p0 = pnand %p1955_p13, %p1949_p8 }
 0x44a   : > { %1959 = shalt.err (!%p1956_p0)
}
 0x44b   : > { %s2001_s16 = smov 128   ;;  %s2002_s17 = smov 8  }
 0x44c   : > { %1752 = dma.vmem_to_hbm [thread:$0]  (%p2071_p5), %s2710_s23, 2432, %s2717_s30, %s2722_s22, %s2001_s16, %s2001_s16, %s2002_s17  }
 0x44d PF: > { %p1758_p1 = scmp.ge.s32.totalorder %s1994_s21, 2  ;;  %s1461_s26 = sand.u32 1, %s1982_s18  }
 0x44e   : > { %s1462_s6 = scalar_lea.sflag [#allocation3], %s1461_s26 }
 0x44f   : > { %p1755_p2 = pnand %p1758_p1, %p2075_p6 }
 0x451   : > { %1977 = dma.done.wait (!%p1755_p2), %s1462_s6, 2432  }
 0x452   : > { %1979 = vsyncadd (!%p1755_p2), %s1462_s6, 4294964864  ;;  %p15_p3 = scmp.ge.s32.totalorder %s2058_s24, 4   ;;  %s2792_s18 = smov %s1986_s19 }
 0x453   : > { %s2793_s19 = smov %s1990_s20  ;;  %s2794_s20 = smov %s2069_s27 }
 0x454   : > { %s2795_s21 = smov %s2058_s24  ;;  %17 = sbr.rel (!%p15_p3) target bundleno = 3 (0x3), region = 75 }
 0x45b   :  { %1467 = vsyncpa [#allocation3], 1 }
 0x45c   :  { %1469 = vsyncpa [#allocation3 + $0x1], 1 }

</bundles_post_ra>
